<compile_context>
chip_gen: v7x
topology: tpu7x:2x2x1
jax: 0.10.0
libtpu: 0.0.40
codegen_flags: <defaults>
</compile_context>

<pallas_src>
import jax
import jax.numpy as jnp
from jax.experimental import pallas as pl
from jax.experimental.pallas import tpu as pltpu


def _pooled_norm_kernel(mask_ref, emb_ref, w_ref, b_ref, out_ref, acc_ref, cnt_ref):
    # mask_ref: [tb, ts]   int32 attention mask tile
    # emb_ref : [tb, ts, Hin] bf16 embedded tokens tile
    # w_ref   : [Hin, H]   bf16 projection weight (resident across the grid)
    # b_ref   : [1, H]     f32 projection bias
    # out_ref : [tb, H]    f32 L2-normalized pooled embeddings (written at last seq tile)
    # acc_ref : [tb, Hin]  f32 running masked sum of embeddings (scratch)
    # cnt_ref : [tb, 1]    f32 running sum of mask (scratch)
    j = pl.program_id(1)

    @pl.when(j == 0)
    def _init():
        acc_ref[...] = jnp.zeros_like(acc_ref)
        cnt_ref[...] = jnp.zeros_like(cnt_ref)

    mask = mask_ref[...].astype(jnp.float32)                    # [tb, ts]
    emb = emb_ref[...].astype(jnp.float32)                      # [tb, ts, Hin]
    # Masked sum over this seq tile: VPU multiply + reduce over the seq axis.
    acc_ref[...] += jnp.sum(emb * mask[:, :, None], axis=1)     # [tb, Hin]
    cnt_ref[...] += jnp.sum(mask, axis=1, keepdims=True)        # [tb, 1]

    @pl.when(j == pl.num_programs(1) - 1)
    def _finalize():
        # Clamp denom so fully-masked / padded batch rows don't produce NaN.
        # (PyTorch reference would NaN here; real rows are assumed non-empty.)
        denom = jnp.maximum(cnt_ref[...], 1.0)                  # [tb, 1]
        pooled_emb = acc_ref[...] / denom                       # [tb, Hin] f32
        # Tiny projection matmul (done once per batch tile, not once per token).
        w = w_ref[...].astype(jnp.float32)
        hidden = jnp.dot(pooled_emb, w,
                         preferred_element_type=jnp.float32)    # [tb, H]
        hidden = hidden + b_ref[...]
        # F.normalize(p=2, dim=1): x / max(||x||, eps)  ==  x * rsqrt(max(||x||^2, eps^2))
        sq = jnp.sum(hidden * hidden, axis=-1, keepdims=True)
        inv_norm = jax.lax.rsqrt(jnp.maximum(sq, 1e-24))
        out_ref[...] = (hidden * inv_norm).astype(out_ref.dtype)


def normalized_model_forward(input_ids, attention_mask, embed_table, w, b,
                             *, tb=8, ts=128, vmem_limit_bytes=None):
    """input_ids/attention_mask: [B, S] int32 -> [B, H] float32 embeddings.

    embed_table: [V, Hin] (bf16), w: [Hin, H] (bf16), b: [H] (f32).
    On v6e/v5e raise `ts` (e.g. 512) and `vmem_limit_bytes`; on v7x keep tiles
    roughly half as big (64 MiB physical VMEM).
    """
    # Glue: embedding lookup (gather) outside the kernel; emb stays bf16 in HBM.
    # TODO(synk): fuse the gather via PrefetchScalarGridSpec + data-dependent DMA
    # from embed_table so the [B, S, Hin] tensor never round-trips HBM.
    emb = jnp.take(embed_table, input_ids, axis=0)              # [B, S, Hin]

    B, S = input_ids.shape
    Hin = embed_table.shape[1]
    H = w.shape[1]

    # Pad batch / seq up to tile multiples; padded positions carry mask 0 so they
    # contribute nothing, and padded batch rows are sliced off at the end.
    Bp = pl.cdiv(B, tb) * tb
    Sp = pl.cdiv(S, ts) * ts
    if (Bp, Sp) != (B, S):
        emb = jnp.pad(emb, ((0, Bp - B), (0, Sp - S), (0, 0)))
        attention_mask = jnp.pad(attention_mask, ((0, Bp - B), (0, Sp - S)))

    grid = (Bp // tb, Sp // ts)

    grid_spec = pltpu.PrefetchScalarGridSpec(
        num_scalar_prefetch=0,
        grid=grid,
        in_specs=[
            pl.BlockSpec((tb, ts), lambda i, j: (i, j)),          # mask
            pl.BlockSpec((tb, ts, Hin), lambda i, j: (i, j, 0)),  # emb
            pl.BlockSpec((Hin, H), lambda i, j: (0, 0)),          # w (resident)
            pl.BlockSpec((1, H), lambda i, j: (0, 0)),            # b (resident)
        ],
        out_specs=pl.BlockSpec((tb, H), lambda i, j: (i, 0)),     # out (resident over j)
        scratch_shapes=[
            pltpu.VMEM((tb, Hin), jnp.float32),                   # masked-sum accumulator
            pltpu.VMEM((tb, 1), jnp.float32),                     # mask-count accumulator
        ],
    )

    out = pl.pallas_call(
        _pooled_norm_kernel,
        out_shape=jax.ShapeDtypeStruct((Bp, H), jnp.float32),
        grid_spec=grid_spec,
        compiler_params=pltpu.CompilerParams(
            dimension_semantics=("parallel", "arbitrary"),
            vmem_limit_bytes=vmem_limit_bytes,
        ),
    )(attention_mask, emb, w, b.reshape(1, H).astype(jnp.float32))

    return out[:B]


def _reference(input_ids, attention_mask, embed_table, w, b):
    """Mirrors the PyTorch module order: project every token, then pool, then normalize."""
    emb = jnp.take(embed_table, input_ids, axis=0).astype(jnp.float32)
    w32 = w.astype(jnp.float32)
    hidden = jnp.einsum("bsi,ih->bsh", emb, w32,
                        precision=jax.lax.Precision.HIGHEST) + b[None, None, :]
    mask = attention_mask.astype(jnp.float32)
    masked = hidden * mask[..., None]
    denom = jnp.maximum(mask.sum(axis=1), 1.0)[..., None]
    pooled = masked.sum(axis=1) / denom
    norm = jnp.sqrt(jnp.sum(pooled * pooled, axis=-1, keepdims=True))
    return pooled / jnp.maximum(norm, 1e-12)


if __name__ == "__main__":
    # Small but lane-aligned shapes (Hin = H = 128 keeps the MXU / stores unmasked).
    B, S, H_IN, H, VOCAB = 16, 256, 128, 128, 1000

    key = jax.random.PRNGKey(0)
    k_emb, k_w, k_b, k_ids, k_len = jax.random.split(key, 5)

    # Deterministic synthetic base_model parameters (bf16 in HBM, per perf review).
    embed_table = (jax.random.normal(k_emb, (VOCAB, H_IN), dtype=jnp.float32)
                   * 0.1).astype(jnp.bfloat16)
    w = (jax.random.normal(k_w, (H_IN, H), dtype=jnp.float32) * 0.1).astype(jnp.bfloat16)
    b = jax.random.normal(k_b, (H,), dtype=jnp.float32) * 0.1

    input_ids = jax.random.randint(k_ids, (B, S), 0, VOCAB, dtype=jnp.int32)
    # Variable-length attention masks (>= 1 valid token per row).
    lengths = jax.random.randint(k_len, (B,), 1, S + 1, dtype=jnp.int32)
    attention_mask = (jnp.arange(S)[None, :] < lengths[:, None]).astype(jnp.int32)

    out = normalized_model_forward(input_ids, attention_mask, embed_table, w, b)
    out = jax.block_until_ready(out)

    ref = _reference(input_ids, attention_mask, embed_table, w, b)
    assert out.shape == (B, H)
    # Pool-before-project is algebraically identical; tolerance covers fp reassociation.
    assert jnp.allclose(out, ref, atol=1e-3, rtol=1e-3)
    # Unit-norm check (L2 normalize semantics), done in f32 inside the kernel.
    assert jnp.allclose(jnp.linalg.norm(out, axis=1), 1.0, atol=1e-4)

    print("KERNEL_OK")
</pallas_src>

<mosaic_0001>
module attributes {stable_mosaic.version = 11 : i64} {
  func.func @_pooled_norm_kernel(%arg0: i32, %arg1: i32, %arg2: memref<8x128xi32, #tpu.memory_space<vmem>>, %arg3: memref<8x128x128xbf16, #tpu.memory_space<vmem>>, %arg4: memref<128x128xbf16, #tpu.memory_space<vmem>>, %arg5: memref<1x128xf32, #tpu.memory_space<vmem>>, %arg6: memref<8x128xf32, #tpu.memory_space<vmem>>, %arg7: memref<8x128xf32, #tpu.memory_space<vmem>>, %arg8: memref<8x1xf32, #tpu.memory_space<vmem>>) attributes {dimension_semantics = [#tpu.dimension_semantics<parallel>, #tpu.dimension_semantics<arbitrary>], iteration_bounds = array<i64: 2, 2>, scalar_prefetch = 0 : i64, scratch_operands = 2 : i64, tpu.core_type = #tpu.core_type<tc>, window_params = [{transform_indices = @transform_0, window_bounds = array<i64: 8, 128>}, {transform_indices = @transform_1, window_bounds = array<i64: 8, 128, 128>}, {pipeline_mode = #tpu.pipeline_mode<synchronous>, transform_indices = @transform_2, window_bounds = array<i64: 128, 128>}, {pipeline_mode = #tpu.pipeline_mode<synchronous>, transform_indices = @transform_3, window_bounds = array<i64: 1, 128>}, {transform_indices = @transform_4, window_bounds = array<i64: 8, 128>}]} {
    %c0_i32 = arith.constant 0 : i32
    %0 = arith.cmpi eq, %arg1, %c0_i32 : i32
    %1 = arith.extui %0 : i1 to i32
    %c0_i32_0 = arith.constant 0 : i32
    %2 = arith.cmpi ne, %1, %c0_i32_0 : i32
    scf.if %2 {
      %cst_15 = arith.constant 0.000000e+00 : f32
      %22 = vector.broadcast %cst_15 : f32 to vector<8x128xf32>
      %c0_16 = arith.constant 0 : index
      %c0_17 = arith.constant 0 : index
      %23 = vector.load %arg7[%c0_16, %c0_17] : memref<8x128xf32, #tpu.memory_space<vmem>>, vector<8x128xf32>
      tpu.vector_store %arg7[%c0_16, %c0_17], %22 {strides = array<i32>} : memref<8x128xf32, #tpu.memory_space<vmem>>, vector<8x128xf32>,
      %cst_18 = arith.constant 0.000000e+00 : f32
      %24 = vector.broadcast %cst_18 : f32 to vector<8x1xf32>
      %c0_19 = arith.constant 0 : index
      %c0_20 = arith.constant 0 : index
      %25 = vector.load %arg8[%c0_19, %c0_20] : memref<8x1xf32, #tpu.memory_space<vmem>>, vector<8x1xf32>
      tpu.vector_store %arg8[%c0_19, %c0_20], %24 {strides = array<i32>} : memref<8x1xf32, #tpu.memory_space<vmem>>, vector<8x1xf32>,
    } else {
    }
    %c0 = arith.constant 0 : index
    %c0_1 = arith.constant 0 : index
    %3 = vector.load %arg2[%c0, %c0_1] : memref<8x128xi32, #tpu.memory_space<vmem>>, vector<8x128xi32>
    %4 = arith.sitofp %3 : vector<8x128xi32> to vector<8x128xf32>
    %c0_2 = arith.constant 0 : index
    %c0_3 = arith.constant 0 : index
    %c0_4 = arith.constant 0 : index
    %5 = vector.load %arg3[%c0_2, %c0_3, %c0_4] : memref<8x128x128xbf16, #tpu.memory_space<vmem>>, vector<8x128x128xbf16>
    %6 = arith.extf %5 : vector<8x128x128xbf16> to vector<8x128x128xf32>
    %c0_5 = arith.constant 0 : index
    %c0_6 = arith.constant 0 : index
    %7 = vector.load %arg7[%c0_5, %c0_6] : memref<8x128xf32, #tpu.memory_space<vmem>>, vector<8x128xf32>
    %8 = vector.shape_cast %4 : vector<8x128xf32> to vector<8x128x1xf32>
    %9 = vector.broadcast %8 : vector<8x128x1xf32> to vector<8x128x128xf32>
    %10 = arith.mulf %6, %9 : vector<8x128x128xf32>
    %cst = arith.constant dense<0.000000e+00> : vector<8x128xf32>
    %11 = vector.multi_reduction <add>, %10, %cst [1] : vector<8x128x128xf32> to vector<8x128xf32>
    %12 = arith.addf %7, %11 : vector<8x128xf32>
    %c0_7 = arith.constant 0 : index
    %c0_8 = arith.constant 0 : index
    %13 = vector.load %arg7[%c0_7, %c0_8] : memref<8x128xf32, #tpu.memory_space<vmem>>, vector<8x128xf32>
    tpu.vector_store %arg7[%c0_7, %c0_8], %12 {strides = array<i32>} : memref<8x128xf32, #tpu.memory_space<vmem>>, vector<8x128xf32>,
    %c0_9 = arith.constant 0 : index
    %c0_10 = arith.constant 0 : index
    %14 = vector.load %arg8[%c0_9, %c0_10] : memref<8x1xf32, #tpu.memory_space<vmem>>, vector<8x1xf32>
    %cst_11 = arith.constant dense<0.000000e+00> : vector<8xf32>
    %15 = vector.multi_reduction <add>, %4, %cst_11 [1] : vector<8x128xf32> to vector<8xf32>
    %16 = vector.shape_cast %15 : vector<8xf32> to vector<8x1xf32>
    %17 = arith.addf %14, %16 : vector<8x1xf32>
    %c0_12 = arith.constant 0 : index
    %c0_13 = arith.constant 0 : index
    %18 = vector.load %arg8[%c0_12, %c0_13] : memref<8x1xf32, #tpu.memory_space<vmem>>, vector<8x1xf32>
    tpu.vector_store %arg8[%c0_12, %c0_13], %17 {strides = array<i32>} : memref<8x1xf32, #tpu.memory_space<vmem>>, vector<8x1xf32>,
    %c1_i32 = arith.constant 1 : i32
    %19 = arith.cmpi eq, %arg1, %c1_i32 : i32
    %20 = arith.extui %19 : i1 to i32
    %c0_i32_14 = arith.constant 0 : i32
    %21 = arith.cmpi ne, %20, %c0_i32_14 : i32
    scf.if %21 {
      %c0_15 = arith.constant 0 : index
      %c0_16 = arith.constant 0 : index
      %22 = vector.load %arg8[%c0_15, %c0_16] : memref<8x1xf32, #tpu.memory_space<vmem>>, vector<8x1xf32>
      %cst_17 = arith.constant 1.000000e+00 : f32
      %23 = vector.broadcast %cst_17 : f32 to vector<8x1xf32>
      %24 = arith.maximumf %22, %23 : vector<8x1xf32>
      %c0_18 = arith.constant 0 : index
      %c0_19 = arith.constant 0 : index
      %25 = vector.load %arg7[%c0_18, %c0_19] : memref<8x128xf32, #tpu.memory_space<vmem>>, vector<8x128xf32>
      %26 = vector.broadcast %24 : vector<8x1xf32> to vector<8x128xf32>
      %27 = arith.divf %25, %26 : vector<8x128xf32>
      %c0_20 = arith.constant 0 : index
      %c0_21 = arith.constant 0 : index
      %28 = vector.load %arg4[%c0_20, %c0_21] : memref<128x128xbf16, #tpu.memory_space<vmem>>, vector<128x128xbf16>
      %29 = arith.extf %28 : vector<128x128xbf16> to vector<128x128xf32>
      %cst_22 = arith.constant dense<0.000000e+00> : vector<8x128xf32>
      %30 = tpu.matmul %27, %29, %cst_22 {dimension_numbers = #tpu.dot_dimension_numbers<[1], [0], [0], [1], [0, 0, 1, 1], [], []>} : vector<8x128xf32>, vector<128x128xf32>, vector<8x128xf32> -> vector<8x128xf32>
      %c0_23 = arith.constant 0 : index
      %c0_24 = arith.constant 0 : index
      %31 = vector.load %arg5[%c0_23, %c0_24] : memref<1x128xf32, #tpu.memory_space<vmem>>, vector<1x128xf32>
      %32 = vector.broadcast %31 : vector<1x128xf32> to vector<8x128xf32>
      %33 = arith.addf %30, %32 : vector<8x128xf32>
      %34 = arith.mulf %33, %33 : vector<8x128xf32>
      %cst_25 = arith.constant dense<0.000000e+00> : vector<8xf32>
      %35 = vector.multi_reduction <add>, %34, %cst_25 [1] : vector<8x128xf32> to vector<8xf32>
      %36 = vector.shape_cast %35 : vector<8xf32> to vector<8x1xf32>
      %cst_26 = arith.constant 1.000000e-24 : f32
      %37 = vector.broadcast %cst_26 : f32 to vector<8x1xf32>
      %38 = arith.maximumf %36, %37 : vector<8x1xf32>
      %39 = math.rsqrt %38 : vector<8x1xf32>
      %40 = vector.broadcast %39 : vector<8x1xf32> to vector<8x128xf32>
      %41 = arith.mulf %33, %40 : vector<8x128xf32>
      %c0_27 = arith.constant 0 : index
      %c0_28 = arith.constant 0 : index
      %42 = vector.load %arg6[%c0_27, %c0_28] : memref<8x128xf32, #tpu.memory_space<vmem>>, vector<8x128xf32>
      tpu.vector_store %arg6[%c0_27, %c0_28], %41 {strides = array<i32>} : memref<8x128xf32, #tpu.memory_space<vmem>>, vector<8x128xf32>,
    } else {
    }
    return
  }
  func.func @transform_0(%arg0: i32, %arg1: i32) -> (i32, i32) {
    %c0_i32 = arith.constant 0 : i32
    return %arg0, %arg1 : i32, i32
  }
  func.func @transform_1(%arg0: i32, %arg1: i32) -> (i32, i32, i32) {
    %c0_i32 = arith.constant 0 : i32
    %c0_i32_0 = arith.constant 0 : i32
    return %arg0, %arg1, %c0_i32 : i32, i32, i32
  }
  func.func @transform_2(%arg0: i32, %arg1: i32) -> (i32, i32) {
    %c0_i32 = arith.constant 0 : i32
    %c0_i32_0 = arith.constant 0 : i32
    %c0_i32_1 = arith.constant 0 : i32
    return %c0_i32, %c0_i32_0 : i32, i32
  }
  func.func @transform_3(%arg0: i32, %arg1: i32) -> (i32, i32) {
    %c0_i32 = arith.constant 0 : i32
    %c0_i32_0 = arith.constant 0 : i32
    %c0_i32_1 = arith.constant 0 : i32
    return %c0_i32, %c0_i32_0 : i32, i32
  }
  func.func @transform_4(%arg0: i32, %arg1: i32) -> (i32, i32) {
    %c0_i32 = arith.constant 0 : i32
    %c0_i32_0 = arith.constant 0 : i32
    return %arg0, %c0_i32 : i32, i32
  }
}

</mosaic_0001>

<bundles_post_ra>
// kernel: tpu_custom_call.1
= control target key start
LH: loop header
LB: loop body
LE: loop exit
PB: predicated region body
PF: predicated region fallthrough
CT: control target
= control target key end

     0   :  { %s3159_s0 = inlined_call_operand.hbm [shape: s32[16,256], index: 0, kind: input, shape index: {}]   ;;  %s3160_s1 = inlined_call_operand.hbm [shape: bf16[16,256,128], index: 1, kind: input, shape index: {}]   ;;  %s3161_s2 = inlined_call_operand.hbm [shape: bf16[128,128], index: 2, kind: input, shape index: {}]   ;;  %s3162_s3 = inlined_call_operand.vmem [shape: f32[1,128], index: 3, kind: input, shape index: {}]   ;;  %s3163_s4 = inlined_call_operand.hbm [shape: f32[16,128], index: 4, kind: output, shape index: {}]  }
   0x1   :  { %3174 = sst [smem:[#allocation26_spill]] %s3159_s0 }
   0x2   :  { %9 = vsyncpa [#allocation5], 0 }
   0x3   :  { %11 = vsyncpa [#allocation5 + $0x1], 0 }
   0x4   :  { %12 = vsyncpa [#allocation8], 0 }
   0x5   :  { %14 = vsyncpa [#allocation8 + $0x1], 0 }
   0x6   :  { %15 = vsyncpa [#allocation6], 0 }
   0x7   :  { %17 = vsyncpa [#allocation6 + $0x1], 0  ;;  %s2532_s15 = smov 0   ;;  %s2534_s16 = smov 0  }
   0x8   :  { %s2536_s17 = smov 0   ;;  %s2538_s18 = smov 0  }
   0x9   :  { %s2540_s19 = smov 0   ;;  %s2542_s20 = smov 0  }
   0xa   :  { %s2544_s21 = smov 0   ;;  %s2546_s22 = smov 0  }
   0xb   :  { %s2548_s23 = smov 0   ;;  %s2550_s24 = smov 0  }
   0xc   :  { %s2552_s25 = smov 0  }
   0xd LB: > { %3175 = sst [smem:[#allocation18_spill]] %s2449_s15  ;;  %s2586_s26 = sadd.s32 4294967295, %s2489_s25   ;;  %s2489_s25 = sphi %s2552_s25, %s23_s25   ;;  %s2485_s24 = sphi %s2550_s24, %s3213_s24   ;;  %s2481_s23 = sphi %s2548_s23, %s3212_s23   ;;  %s2477_s22 = sphi %s2546_s22, %s3211_s22   ;;  %s2473_s21 = sphi %s2544_s21, %s3210_s21   ;;  %s2469_s20 = sphi %s2542_s20, %s3209_s20   ;;  %s2465_s19 = sphi %s2540_s19, %s3208_s19   ;;  %s2461_s18 = sphi %s2538_s18, %s3207_s18   ;;  %s2457_s17 = sphi %s2536_s17, %s3201_s17   ;;  %s2453_s16 = sphi %s2534_s16, %s3206_s16   ;;  %s2449_s15 = sphi %s2532_s15, %s3205_s15  }
   0xe   : > { %3176 = sst [smem:[#allocation19_spill]] %s2457_s17  ;;  %s1707_s27 = sadd.s32 4294967294, %s2489_s25  }
   0xf   : > { %s32_s28 = sadd.s32 1, %s2481_s23  ;;  %s35_s29 = sadd.s32 1, %s2485_s24 }
  0x10   : > { %p33_p0 = scmp.ge.s32.totalorder %s32_s28, 2  ;;  %s44_s30 = sadd.s32 1, %s2469_s20 }
  0x11   : > { %p51_p1 = scmp.ne.s32.totalorder %s2469_s20, %s2465_s19  ;;  %p52_p2 = scmp.eq.s32.totalorder %s2489_s25, 0 }
  0x12   : > { %s3215_s28 = smov (%p33_p0, %s32_s28), 0  ;;  %s3217_s29 = smov (!%p33_p0, %s35_s29), %s2485_s24 }
  0x13   : > { %3177 = sst [smem:[#allocation20_spill]] %s3215_s28  ;;  %s40_s5 = ssub.s32 %s2481_s23, %s3215_s28 }
  0x14   : > { %p2600_p3 = por %p52_p2, %p51_p1  ;;  %p37_p4 = scmp.ge.s32.totalorder %s3217_s29, 2 }
  0x15   : > { %p57_p5 = scmp.ne.s32.totalorder %s2465_s19, %s2461_s18  ;;  %p3166_p6 = scmp.eq.s32.totalorder %s2586_s26, 0 }
  0x16   : > { %s3178_s6 = scalar_select %p2600_p3, 1, 0 }
  0x17   : > { %s140_s7 = sadd.s32 1, %s2457_s17  ;;  %s3219_s29 = smov (%p37_p4, %s3217_s29), 0 }
  0x18   : > { %3179 = sst [smem:[#allocation21_spill]] %s3219_s29  ;;  %p2611_p7 = por %p3166_p6, %p57_p5 }
  0x19   : > { %p150_p8 = scmp.ne.s32.totalorder %s2457_s17, %s2453_s16  ;;  %s39_s9 = ssub.s32 %s2485_s24, %s3219_s29 }
  0x1a   : > { %s3180_s8 = scalar_select %p2611_p7, 1, 0 }
  0x1b   : > { %p151_p9 = scmp.eq.s32.totalorder %s2586_s26, 3  ;;  %s41_s10 = sor.u32 %s40_s5, %s39_s9 }
  0x1c   : > { %p138_p10 = scmp.eq.s32.totalorder %s39_s9, 0  ;;  %p42_p11 = scmp.eq.s32.totalorder %s41_s10, 0 }
  0x1d   : > { %p2620_p12 = por %p151_p9, %p150_p8  ;;  %p156_p13 = scmp.ne.s32.totalorder %s2453_s16, %s2449_s15 }
  0x1e   : > { %s2625_s12 = scalar_select %p138_p10, %s2457_s17, %s140_s7  }
  0x1f   : > { %s3181_s11 = scalar_select %p2620_p12, 1, 0 }
  0x20   : > { %3182 = sst [smem:[#allocation22_spill]] %s2625_s12  ;;  %p157_p0 = scmp.eq.s32.totalorder %s1707_s27, 3 }
  0x21   : > { %s2628_s13 = scalar_select %p42_p11, %s2469_s20, %s44_s30  }
  0x22   : > { %p1708_p1 = scmp.ge.s32.totalorder %s2489_s25, 1  ;;  %p164_p2 = scmp.lt.s32.totalorder %s2489_s25, 5 }
  0x23   : > { %3183 = sst [smem:[#allocation23_spill]] %s2628_s13  ;;  %p2634_p4 = por %p157_p0, %p156_p13 }
  0x24   : > { %p2638_p5 = pnand %p1708_p1, %p164_p2  ;;  %s2491_s5 = smov [#allocation9]  }
  0x25   : > { %s3184_s14 = scalar_select %p2634_p4, 1, 0 }
  0x26   : > { %s3186_s18 = scalar_select %p2638_p5, 1, 0 }
  0x27   : > { %3185 = sst [smem:[#allocation24_spill]] %s3184_s14  ;;  %s176_s9 = sshll.u32 %s2491_s5, 4  ;;  %s177_s9 = int_to_ptr.vmem [resolvable:$true] %s176_s9 }
  0x28   : > { %p2185_p8 = pneg %p2638_p5  ;;  %s2303_s10 = scalar_lea.hbm %s3161_s2, 1024 }
  0x29   : > { %p2304_p10 = scmp.ne.s32.totalorder %s3161_s2, %s2303_s10  ;;  %p2310_p1 = scmp.lt.u32.totalorder %s2303_s10, %s3161_s2 }
  0x2a   : > { %p2646_p9 = pnand %p2185_p8, %p3166_p6 }
  0x2c   : > { %p2305_p11 = pneg %p2646_p9 }
  0x2e   : > { %p2306_p13 = pnand %p2305_p11, %p2304_p10 }
  0x30   : > { %p2307_p0 = pneg %p2306_p13 }
  0x32   : > { %p2312_p2 = pnand %p2310_p1, %p2307_p0 }
  0x34   : > { %2315 = shalt.err (!%p2312_p2)
}
  0x35   : > { %s2316_s12 = scalar_lea.vmem %s177_s9, 1024  ;;  %p2324_p12 = scmp.lt.s32.totalorder %s177_s9, %s177_s9 }
  0x36   : > { %p2317_p8 = scmp.ne.s32.totalorder %s177_s9, %s2316_s12  ;;  %p2325_p7 = scmp.lt.s32.totalorder %s2316_s12, %s2316_s12 }
  0x38   : > { %p2319_p6 = pnand %p2317_p8, %p2305_p11  ;;  %p2326_p5 = por %p2325_p7, %p2324_p12 }
  0x3a   : > { %p2320_p4 = pneg %p2319_p6 }
  0x3c   : > { %p2327_p3 = pnand %p2326_p5, %p2320_p4 }
  0x3e   : > { %2330 = shalt.err (!%p2327_p3)
}
  0x3f   : > { %s2492_s28 = smov 64   ;;  %s2493_s29 = smov 4  }
  0x40   : > { %2188 = dma.hbm_to_vmem [thread:$0]  (!%p2646_p9), %s3161_s2, 1024, %s177_s9, [#allocation8], %s2492_s28, %s2492_s28, %s2493_s29  }
  0x41   : > { %p1710_p10 = scmp.ge.s32.totalorder %s2489_s25, 4 }
  0x42   : > { %s2668_s13 = sand.u32 (!%p1710_p10), 1, %s2469_s20   ;;  %s1712_s12 = sshll.u32 (!%p1710_p10), %s2485_s24, 1 }
  0x43   : > { %189 = sbr.rel (%p1710_p10) target bundleno = 114 (0x72), region = 24  ;;  %s1711_s10 = sshll.u32 (!%p1710_p10), %s2668_s13, 3 }
  0x44   : > { %s202_s5 = sadd.s32 (!%p1710_p10), %s2481_s23, %s1712_s12  ;;  %s197_s30 = scalar_lea.vmem (!%p1710_p10), [#allocation4], %s1711_s10 }
  0x45   : > { %s1713_s17 = sshll.u32 (!%p1710_p10), %s202_s5, 7  ;;  %s206_s14 = sshll.u32 (!%p1710_p10), %s197_s30, 4  ;;  %s207_s14 = int_to_ptr.vmem [resolvable:$true] %s206_s14 }
  0x46   : > { %s3188_s0 = sld [smem:[#allocation26_spill]] (!%p1710_p10)  ;;  %s194_s28 = scalar_lea.sflag (!%p1710_p10), [#allocation5], %s2668_s13 }
  0x47   : > { %p3189_p6 = scmp.ne.s32.totalorder (!%p1710_p10), %s3178_s6, 0 }
  0x4c   : > { %s2676_s9 = scalar_lea.hbm %s3188_s0, %s1713_s17  ;;  %s2335_s10 = scalar_lea.hbm %s3188_s0, 512 }
  0x4d   : > { %s2331_s29 = scalar_lea.hbm %s2676_s9, 128  ;;  %p2336_p4 = scmp.lt.u32.totalorder %s2676_s9, %s3188_s0 }
  0x4e   : > { %p2332_p3 = scmp.ne.s32.totalorder %s2676_s9, %s2331_s29  ;;  %p2337_p5 = scmp.lt.u32.totalorder %s2335_s10, %s2331_s29 }
  0x4f   : > { %p2339_p11 = scmp.lt.u32.totalorder %s2331_s29, %s2676_s9 }
  0x50   : > { %p2333_p7 = pnand %p2332_p3, %p3189_p6  ;;  %p2338_p9 = por %p2337_p5, %p2336_p4 }
  0x52   : > { %p2334_p12 = pneg %p2333_p7  ;;  %p2340_p13 = por %p2339_p11, %p2338_p9 }
  0x54   : > { %p2341_p0 = pnand %p2340_p13, %p2334_p12 }
  0x56   : > { %2344 = shalt.err (!%p2341_p0)
}
  0x57   : > { %s2345_s15 = scalar_lea.vmem %s207_s14, 128  ;;  %s2494_s17 = smov [#allocation4]  }
  0x58   : > { %p2346_p1 = scmp.ne.s32.totalorder %s207_s14, %s2345_s15  ;;  %s2349_s27 = sshll.u32 %s2494_s17, 4  ;;  %s2350_s27 = int_to_ptr.vmem [resolvable:$false] %s2349_s27 }
  0x59   : > { %s2351_s7 = scalar_lea.vmem %s2350_s27, 256  ;;  %p2352_p10 = scmp.lt.s32.totalorder %s207_s14, %s2350_s27 }
  0x5a   : > { %p2347_p2 = pnand %p2346_p1, %p3189_p6  ;;  %p2353_p3 = scmp.lt.s32.totalorder %s2351_s7, %s2345_s15 }
  0x5c   : > { %p2348_p8 = pneg %p2347_p2  ;;  %p2354_p7 = por %p2353_p3, %p2352_p10 }
  0x5e   : > { %p2355_p4 = pnand %p2354_p7, %p2348_p8 }
  0x60   : > { %2358 = shalt.err (!%p2355_p4)
}
  0x61   : > { %2170 = dma.hbm_to_vmem [thread:$0]  (%p3189_p6), %s2676_s9, 128, %s207_s14, %s194_s28  }
  0x62   : > { %s1714_s29 = sshll.u32 %s2668_s13, 9  ;;  %s213_s12 = sand.u32 1, %s2489_s25  }
  0x63   : > { %s1716_s10 = sshll.u32 %s2481_s23, 4  ;;  %s1733_s5 = sshll.u32 %s2485_s24, 8 }
  0x64   : > { %s224_s30 = sadd.s32 %s1733_s5, %s1716_s10  ;;  %s217_s15 = scalar_lea.vmem [#allocation7], %s1714_s29 }
  0x65   : > { %s239_s17 = sshll.u32 %s217_s15, 4  ;;  %s1718_s27 = sshll.u32 %s224_s30, 6  ;;  %s240_s17 = int_to_ptr.vmem [resolvable:$true] %s239_s17 }
  0x66   : > { %s2171_s14 = scalar_select %p3189_p6, [#allocation0], [#allocation13] }
  0x67   : > { %s2495_s9 = smov 2048   ;;  %s2496_s7 = smov 1024  }
  0x68   : > { %2172 = sst [smem:[#allocation12]] (%p3189_p6), %s2495_s9  ;;  %s2497_s13 = smov 16  }
  0x69   : > { %s231_s28 = sld [smem:[%s2171_s14]]   ;;  %s2498_s10 = smov 64  }
  0x6a   : > { %2173 = sst [smem:[#allocation12 + $0x1]] (%p3189_p6), %s2496_s7  ;;  %s226_s30 = scalar_lea.hbm %s3160_s1, %s1718_s27 }
  0x6b   : > { %2174 = sst [smem:[#allocation12 + $0x2]] (%p3189_p6), %s2497_s13  ;;  %s2499_s15 = smov 4  }
  0x6c   : > { %2175 = sst [smem:[#allocation12 + $0x3]] (%p3189_p6), %s2498_s10  ;;  %s214_s0 = scalar_lea.sflag [#allocation8], %s213_s12 }
  0x6d   : > { %2176 = sst [smem:[#allocation12 + $0x4]] (%p3189_p6), %s2498_s10  ;;  %s2500_s7 = smov [#allocation11]  }
  0x6e   : > { %2177 = sst [smem:[#allocation12 + $0x5]] (%p3189_p6), %s2499_s15 }
  0x6f   : > { %s1719_s14 = sshll.u32 %s231_s28, 26 }
  0x70   : > { %s1720_s9 = sadd.s32 134217728, %s1719_s14 }
  0x71   : > { %2178 = dma.general (%p3189_p6), %s226_s30, 8192, %s240_s17, %s214_s0, %s2500_s7, [#allocation12], %s1720_s9, 0  }
  0x72 PF: > { %p3190_p12 = scmp.ne.s32.totalorder %s3186_s18, 0 }
  0x74   : > { %264 = sbr.rel (%p3190_p12) target bundleno = 1127 (0x467), region = 36 }
  0x7b   : > { %s266_s13 = sand.u32 1, %s2465_s19   ;;  %p3191_p5 = scmp.ne.s32.totalorder %s3180_s8, 0 }
  0x7c   : > { %s1722_s29 = sshll.u32 %s266_s13, 3  ;;  %s267_s27 = scalar_lea.sflag [#allocation5], %s266_s13 }
  0x7d   : > { %s270_s5 = scalar_lea.vmem [#allocation4], %s1722_s29 }
  0x7e   : > { %2432 = dma.done.wait (%p3191_p5), %s267_s27, 128  }
  0x7f   : > { %2434 = vsyncadd (%p3191_p5), %s267_s27, 4294967168  ;;  %s275_s12 = sand.u32 1, %s2586_s26   ;;  %s1723_s6 = sshll.u32 %s266_s13, 9 }
  0x80   : > { %s276_s0 = scalar_lea.sflag [#allocation8], %s275_s12  ;;  %s2727_s17 = scalar_lea.vmem [#allocation7], %s1723_s6 }
  0x81   : > { %2436 = dma.done.wait (%p3191_p5), %s276_s0, 8192  }
  0x82   : > { %2438 = vsyncadd (%p3191_p5), %s276_s0, 4294959104  ;;  %p3192_p6 = scmp.eq.s32.totalorder %s2586_s26, 0 }
  0x84   : > { %2440 = dma.done.wait (%p3192_p6), [#allocation8], 1024   ;;  %p3193_p9 = pmov %p3192_p6 }
  0x85   : > { %s310_s18 = sand.u32 1, %s2453_s16   ;;  %p1726_p11 = scmp.ne.s32.totalorder %s2473_s21, 0 }
  0x86   : > { %2442 = vsyncadd (%p3193_p9), [#allocation8], 4294966272  ;;  %s2740_s28 = sshll.u32 %s310_s18, 3  ;;  %vm320_vm0 = vcmask (!%p1726_p11), 7168   ;;  %v2501_v0 = vmov (!%p1726_p11), 0.0  }
  0x87   : > { %s312_s10 = scalar_lea.vmem [#allocation10], %s2740_s28  ;;  %318 = sbr.rel (%p1726_p11) target bundleno = 142 (0x8e), region = 52  ;;  %319 = vst [vmem:[#allocation2] sm:$0xff] (!%p1726_p11), %v2501_v0  ;;  %321 = vst.msk [vmem:[#allocation3] sm:$0xff] (!%p1726_p11), %vm320_vm0, %v2501_v0 }
  0x8e PF: > { %v322_v1 = vld [vmem:[%s270_s5] sm:$0xff]  ;;  %v581_v2 = vlaneseq  ;;  %v1735_v25 = vld [vmem:[%s2727_s17] sm:$0xff]   ;;  %v2022_v29 = vld [vmem:[%s2727_s17 + $0x8] sm:$0xff]   ;;  %vm1421_vm1 = vcmask 1041409   ;;  %vm1423_vm2 = vcmask 1042434   ;;  %vm1425_vm3 = vcmask 1043459  }
  0x8f   : > { %v2744_v3 = vcvt.s32.f32 %v322_v1  ;;  %v1737_v26 = vunpack.c.h.bf16 %v1735_v25  ;;  %v1736_v30 = vunpack.c.l.bf16 %v1735_v25  ;;  %v1740_v31 = vunpack.c.l.bf16 %v2022_v29  ;;  %v2029_v36 = vld [vmem:[%s2727_s17 + $0x40] sm:$0xff]   ;;  %v2030_v44 = vld [vmem:[%s2727_s17 + $0x48] sm:$0xff]   ;;  %v2023_v45 = vld [vmem:[%s2727_s17 + $0x10] sm:$0xff]   ;;  %p1727_p13 = scmp.ne.s32.totalorder %s2473_s21, 1 }
  0x90   : > { %v2746_v4 = vshrl.u32 %v581_v2, 7  ;;  %v1741_v38 = vunpack.c.h.bf16 %v2022_v29  ;;  %v1769_v42 = vunpack.c.h.bf16 %v2029_v36  ;;  %v1768_v43 = vunpack.c.l.bf16 %v2029_v36  ;;  %v2031_v54 = vld [vmem:[%s2727_s17 + $0x50] sm:$0xff]   ;;  %v2032_v2 = vld [vmem:[%s2727_s17 + $0x58] sm:$0xff]   ;;  %v2033_v25 = vld [vmem:[%s2727_s17 + $0x60] sm:$0xff]  }
  0x91   : > { %v1773_v52 = vunpack.c.h.bf16 %v2030_v44  ;;  %v1772_v53 = vunpack.c.l.bf16 %v2030_v44  ;;  %v1744_v55 = vunpack.c.l.bf16 %v2023_v45  ;;  %v1745_v56 = vunpack.c.h.bf16 %v2023_v45 }
  0x92   : > { %v583_v5 = vsub.s32 0, %v2746_v4  ;;  %v650_v7 = vsub.s32 1, %v2746_v4  ;;  %v717_v9 = vsub.s32 2, %v2746_v4  ;;  %v784_v11 = vsub.s32 3, %v2746_v4 }
  0x93   : > { %v851_v17 = vsub.s32 4, %v2746_v4  ;;  %v1776_v60 = vunpack.c.l.bf16 %v2031_v54  ;;  %v1777_v0 = vunpack.c.h.bf16 %v2031_v54  ;;  %vm1427_vm4 = vcmask 1044484  }
  0x94   : > { %v584_v6 = vrot.slane %v2744_v3, %v583_v5  ;;  %v651_v8 = vrot.slane %v2744_v3, %v650_v7  ;;  %v718_v10 = vrot.slane %v2744_v3, %v717_v9  ;;  %v785_v12 = vrot.slane %v2744_v3, %v784_v11 }
  0x95   : > { %v2760_v20 = vrot.slane %v2744_v3, %v851_v17  ;;  %v918_v5 = vsub.s32 5, %v2746_v4  ;;  %v1781_v17 = vunpack.c.h.bf16 %v2032_v2  ;;  %vm1429_vm5 = vcmask 1045509  }
  0x96   : > { %594 = vbcast.lane.b32.xlu1 %v584_v6, 272  ;;  %586 = vbcast.lane.b32.xlu0 %v584_v6, 256  ;;  %vm1431_vm6 = vcmask 1046534   ;;  %vm1433_vm7 = vcmask 1047559   ;;  %vm1442_vm8 = vcmask 7168   ;;  %vm2504_vm9 = vmmov (!%p1727_p13), 0  }
  0x9a   : > { %598 = vbcast.lane.b32.xlu1 %v584_v6, 280  ;;  %590 = vbcast.lane.b32.xlu0 %v584_v6, 264 }
  0x9e   : > { %606 = vbcast.lane.b32.xlu1 %v584_v6, 296  ;;  %602 = vbcast.lane.b32.xlu0 %v584_v6, 288 }
  0xa2   : > { %614 = vbcast.lane.b32.xlu1 %v584_v6, 312  ;;  %610 = vbcast.lane.b32.xlu0 %v584_v6, 304 }
  0xa6   : > { %622 = vbcast.lane.b32.xlu1 %v584_v6, 328  ;;  %618 = vbcast.lane.b32.xlu0 %v584_v6, 320 }
  0xaa   : > { %630 = vbcast.lane.b32.xlu1 %v584_v6, 344  ;;  %626 = vbcast.lane.b32.xlu0 %v584_v6, 336 }
  0xae   : > { %638 = vbcast.lane.b32.xlu1 %v584_v6, 360  ;;  %634 = vbcast.lane.b32.xlu0 %v584_v6, 352 }
  0xb2   : > { %646 = vbcast.lane.b32.xlu1 %v584_v6, 376  ;;  %642 = vbcast.lane.b32.xlu0 %v584_v6, 368  ;;  %v2024_v6 = vld [vmem:[%s2727_s17 + $0x18] sm:$0xff]  }
  0xb3   : > { %v1749_v29 = vunpack.c.h.bf16 %v2024_v6 }
  0xb6   : > { %657 = vbcast.lane.b32.xlu1 %v651_v8, 264  ;;  %653 = vbcast.lane.b32.xlu0 %v651_v8, 256 }
  0xba   : > { %665 = vbcast.lane.b32.xlu1 %v651_v8, 280  ;;  %661 = vbcast.lane.b32.xlu0 %v651_v8, 272 }
  0xbe   : > { %673 = vbcast.lane.b32.xlu1 %v651_v8, 296  ;;  %669 = vbcast.lane.b32.xlu0 %v651_v8, 288 }
  0xc2   : > { %681 = vbcast.lane.b32.xlu1 %v651_v8, 312  ;;  %677 = vbcast.lane.b32.xlu0 %v651_v8, 304 }
  0xc6   : > { %689 = vbcast.lane.b32.xlu1 %v651_v8, 328  ;;  %685 = vbcast.lane.b32.xlu0 %v651_v8, 320 }
  0xca   : > { %697 = vbcast.lane.b32.xlu1 %v651_v8, 344  ;;  %693 = vbcast.lane.b32.xlu0 %v651_v8, 336 }
  0xce   : > { %705 = vbcast.lane.b32.xlu1 %v651_v8, 360  ;;  %701 = vbcast.lane.b32.xlu0 %v651_v8, 352 }
  0xd2   : > { %713 = vbcast.lane.b32.xlu1 %v651_v8, 376  ;;  %709 = vbcast.lane.b32.xlu0 %v651_v8, 368 }
  0xd6   : > { %724 = vbcast.lane.b32.xlu1 %v718_v10, 264  ;;  %720 = vbcast.lane.b32.xlu0 %v718_v10, 256 }
  0xda   : > { %732 = vbcast.lane.b32.xlu1 %v718_v10, 280  ;;  %728 = vbcast.lane.b32.xlu0 %v718_v10, 272 }
  0xde   : > { %740 = vbcast.lane.b32.xlu1 %v718_v10, 296  ;;  %736 = vbcast.lane.b32.xlu0 %v718_v10, 288 }
  0xe2   : > { %748 = vbcast.lane.b32.xlu1 %v718_v10, 312  ;;  %744 = vbcast.lane.b32.xlu0 %v718_v10, 304 }
  0xe6   : > { %756 = vbcast.lane.b32.xlu1 %v718_v10, 328  ;;  %752 = vbcast.lane.b32.xlu0 %v718_v10, 320 }
  0xea   : > { %764 = vbcast.lane.b32.xlu1 %v718_v10, 344  ;;  %760 = vbcast.lane.b32.xlu0 %v718_v10, 336 }
  0xee   : > { %772 = vbcast.lane.b32.xlu1 %v718_v10, 360  ;;  %768 = vbcast.lane.b32.xlu0 %v718_v10, 352 }
  0xf2   : > { %780 = vbcast.lane.b32.xlu1 %v718_v10, 376  ;;  %776 = vbcast.lane.b32.xlu0 %v718_v10, 368 }
  0xf6   : > { %791 = vbcast.lane.b32.xlu1 %v785_v12, 264  ;;  %787 = vbcast.lane.b32.xlu0 %v785_v12, 256 }
  0xfa   : > { %799 = vbcast.lane.b32.xlu1 %v785_v12, 280  ;;  %795 = vbcast.lane.b32.xlu0 %v785_v12, 272 }
  0xfe   : > { %807 = vbcast.lane.b32.xlu1 %v785_v12, 296  ;;  %803 = vbcast.lane.b32.xlu0 %v785_v12, 288 }
 0x102   : > { %815 = vbcast.lane.b32.xlu1 %v785_v12, 312  ;;  %811 = vbcast.lane.b32.xlu0 %v785_v12, 304 }
 0x106   : > { %823 = vbcast.lane.b32.xlu1 %v785_v12, 328  ;;  %819 = vbcast.lane.b32.xlu0 %v785_v12, 320 }
 0x108   : > { %v595_v13 = vpop.permute.xlu1 %594  ;;  %v587_v14 = vpop.permute.xlu0 %586 }
 0x109   : > { %v1117_v35 = vmul.f32 %v1736_v30, %v587_v14  ;;  %v1119_v37 = vmul.f32 %v1740_v31, %v595_v13 }
 0x10a   : > { %831 = vbcast.lane.b32.xlu1 %v785_v12, 344  ;;  %827 = vbcast.lane.b32.xlu0 %v785_v12, 336 }
 0x10c   : > { %v599_v15 = vpop.permute.xlu1 %598  ;;  %v591_v16 = vpop.permute.xlu0 %590 }
 0x10d   : > { %v1118_v32 = vmul.f32 %v1737_v26, %v591_v16  ;;  %v1120_v46 = vmul.f32 %v1741_v38, %v599_v15  ;;  %v1780_v15 = vunpack.c.l.bf16 %v2032_v2  ;;  %v1748_v16 = vunpack.c.l.bf16 %v2024_v6 }
 0x10e   : > { %839 = vbcast.lane.b32.xlu1 %v785_v12, 360  ;;  %835 = vbcast.lane.b32.xlu0 %v785_v12, 352 }
 0x10f   : > { %v1245_v39 = vadd.f32 %v1118_v32, %v1117_v35 }
 0x110   : > { %v2757_v18 = vpop.permute.xlu1 %606  ;;  %v603_v19 = vpop.permute.xlu0 %602 }
 0x111   : > { %v1246_v47 = vadd.f32 %v1245_v39, %v1119_v37  ;;  %v1121_v1 = vmul.f32 %v1744_v55, %v603_v19  ;;  %v1122_v8 = vmul.f32 %v1745_v56, %v2757_v18  ;;  %v2809_v19 = vrot.slane %v2744_v3, %v918_v5  ;;  %v2025_v39 = vld [vmem:[%s2727_s17 + $0x20] sm:$0xff]  }
 0x112   : > { %847 = vbcast.lane.b32.xlu1 %v785_v12, 376  ;;  %843 = vbcast.lane.b32.xlu0 %v785_v12, 368  ;;  %v985_v18 = vsub.s32 6, %v2746_v4  ;;  %v1784_v37 = vunpack.c.l.bf16 %v2033_v25 }
 0x113   : > { %v1247_v57 = vadd.f32 %v1246_v47, %v1120_v46 }
 0x114   : > { %v2762_v21 = vpop.permute.xlu1 %614  ;;  %v2764_v22 = vpop.permute.xlu0 %610 }
 0x115   : > { %v1248_v9 = vadd.f32 %v1247_v57, %v1121_v1  ;;  %v1123_v38 = vmul.f32 %v1748_v16, %v2764_v22  ;;  %v1124_v45 = vmul.f32 %v1749_v29, %v2762_v21  ;;  %v1785_v22 = vunpack.c.h.bf16 %v2033_v25  ;;  %v2027_v25 = vld [vmem:[%s2727_s17 + $0x30] sm:$0xff]  }
 0x116   : > { %858 = vbcast.lane.b32.xlu1 %v2760_v20, 264  ;;  %854 = vbcast.lane.b32.xlu0 %v2760_v20, 256 }
 0x117   : > { %v1249_v30 = vadd.f32 %v1248_v9, %v1122_v8 }
 0x118   : > { %v2768_v23 = vpop.permute.xlu1 %622  ;;  %v2770_v24 = vpop.permute.xlu0 %618 }
 0x119   : > { %v1250_v46 = vadd.f32 %v1249_v30, %v1123_v38 }
 0x11a   : > { %866 = vbcast.lane.b32.xlu1 %v2760_v20, 280  ;;  %862 = vbcast.lane.b32.xlu0 %v2760_v20, 272 }
 0x11b   : > { %v1251_v54 = vadd.f32 %v1250_v46, %v1124_v45 }
 0x11c   : > { %v2775_v27 = vpop.permute.xlu1 %630  ;;  %v2777_v28 = vpop.permute.xlu0 %626 }
 0x11e   : > { %874 = vbcast.lane.b32.xlu1 %v2760_v20, 296  ;;  %870 = vbcast.lane.b32.xlu0 %v2760_v20, 288 }
 0x120   : > { %v2782_v33 = vpop.permute.xlu1 %638  ;;  %v2784_v34 = vpop.permute.xlu0 %634 }
 0x122   : > { %882 = vbcast.lane.b32.xlu1 %v2760_v20, 312  ;;  %878 = vbcast.lane.b32.xlu0 %v2760_v20, 304 }
 0x124   : > { %v2789_v40 = vpop.permute.xlu1 %646  ;;  %v2791_v41 = vpop.permute.xlu0 %642 }
 0x126   : > { %890 = vbcast.lane.b32.xlu1 %v2760_v20, 328  ;;  %886 = vbcast.lane.b32.xlu0 %v2760_v20, 320 }
 0x128   : > { %v658_v48 = vpop.permute.xlu1 %657  ;;  %v654_v49 = vpop.permute.xlu0 %653 }
 0x129   : > { %v1134_v50 = vmul.f32 %v1769_v42, %v658_v48  ;;  %v1133_v51 = vmul.f32 %v1768_v43, %v654_v49  ;;  %v1052_v43 = vsub.s32 7, %v2746_v4  ;;  %v1752_v49 = vunpack.c.l.bf16 %v2025_v39 }
 0x12a   : > { %898 = vbcast.lane.b32.xlu1 %v2760_v20, 344  ;;  %894 = vbcast.lane.b32.xlu0 %v2760_v20, 336  ;;  %v1753_v4 = vunpack.c.h.bf16 %v2025_v39 }
 0x12b   : > { %v1266_v61 = vadd.f32 %v1134_v50, %v1133_v51  ;;  %v1125_v56 = vmul.f32 %v1752_v49, %v2770_v24  ;;  %v2037_v24 = vld [vmem:[%s2727_s17 + $0x80] sm:$0xff]  }
 0x12c   : > { %v666_v58 = vpop.permute.xlu1 %665  ;;  %v662_v59 = vpop.permute.xlu0 %661 }
 0x12d   : > { %v1136_v62 = vmul.f32 %v1773_v52, %v666_v58  ;;  %v1135_v63 = vmul.f32 %v1772_v53, %v662_v59  ;;  %v2825_v52 = vrot.slane %v2744_v3, %v1052_v43  ;;  %v2034_v53 = vld [vmem:[%s2727_s17 + $0x68] sm:$0xff]   ;;  %v2036_v43 = vld [vmem:[%s2727_s17 + $0x78] sm:$0xff]  }
 0x12e   : > { %906 = vbcast.lane.b32.xlu1 %v2760_v20, 360  ;;  %902 = vbcast.lane.b32.xlu0 %v2760_v20, 352  ;;  %v1788_v59 = vunpack.c.l.bf16 %v2034_v53  ;;  %v1789_v2 = vunpack.c.h.bf16 %v2034_v53 }
 0x12f   : > { %v1267_v7 = vadd.f32 %v1266_v61, %v1135_v63  ;;  %v1126_v61 = vmul.f32 %v1753_v4, %v2768_v23 }
 0x130   : > { %v674_v10 = vpop.permute.xlu1 %673  ;;  %v670_v11 = vpop.permute.xlu0 %669 }
 0x131   : > { %v1138_v12 = vmul.f32 %v1777_v0, %v674_v10  ;;  %v1268_v13 = vadd.f32 %v1267_v7, %v1136_v62  ;;  %v1137_v14 = vmul.f32 %v1776_v60, %v670_v11  ;;  %v2026_v60 = vld [vmem:[%s2727_s17 + $0x28] sm:$0xff]   ;;  %v1252_v62 = vadd.f32 %v1251_v54, %v1125_v56  ;;  %v2035_v7 = vld [vmem:[%s2727_s17 + $0x70] sm:$0xff]  }
 0x132   : > { %914 = vbcast.lane.b32.xlu1 %v2760_v20, 376  ;;  %910 = vbcast.lane.b32.xlu0 %v2760_v20, 368  ;;  %v2818_v20 = vrot.slane %v2744_v3, %v985_v18  ;;  %v1756_v1 = vunpack.c.l.bf16 %v2026_v60  ;;  %v1757_v8 = vunpack.c.h.bf16 %v2026_v60  ;;  %v1801_v11 = vunpack.c.h.bf16 %v2037_v24 }
 0x133   : > { %v1269_v26 = vadd.f32 %v1268_v13, %v1137_v14  ;;  %v1253_v9 = vadd.f32 %v1252_v62, %v1126_v61  ;;  %v1792_v16 = vunpack.c.l.bf16 %v2035_v7 }
 0x134   : > { %v682_v31 = vpop.permute.xlu1 %681  ;;  %v678_v32 = vpop.permute.xlu0 %677  ;;  %v1127_v13 = vmul.f32 %v1756_v1, %v2777_v28  ;;  %v1128_v18 = vmul.f32 %v1757_v8, %v2775_v27  ;;  %v1761_v27 = vunpack.c.h.bf16 %v2027_v25 }
 0x135   : > { %v1270_v35 = vadd.f32 %v1269_v26, %v1138_v12  ;;  %v1139_v36 = vmul.f32 %v1780_v15, %v678_v32  ;;  %v1140_v42 = vmul.f32 %v1781_v17, %v682_v31  ;;  %v1800_v12 = vunpack.c.l.bf16 %v2037_v24  ;;  %v2038_v17 = vld [vmem:[%s2727_s17 + $0x88] sm:$0xff]   ;;  %v2041_v24 = vld [vmem:[%s2727_s17 + $0xa0] sm:$0xff]  }
 0x136   : > { %925 = vbcast.lane.b32.xlu1 %v2809_v19, 264  ;;  %921 = vbcast.lane.b32.xlu0 %v2809_v19, 256  ;;  %v1254_v26 = vadd.f32 %v1253_v9, %v1127_v13  ;;  %v1804_v28 = vunpack.c.l.bf16 %v2038_v17 }
 0x137   : > { %v1271_v44 = vadd.f32 %v1270_v35, %v1139_v36  ;;  %v1805_v35 = vunpack.c.h.bf16 %v2038_v17  ;;  %v1760_v36 = vunpack.c.l.bf16 %v2027_v25 }
 0x138   : > { %v690_v47 = vpop.permute.xlu1 %689  ;;  %v686_v48 = vpop.permute.xlu0 %685  ;;  %v1255_v45 = vadd.f32 %v1254_v26, %v1128_v18  ;;  %v2042_v18 = vld [vmem:[%s2727_s17 + $0xa8] sm:$0xff]  }
 0x139   : > { %v1272_v50 = vadd.f32 %v1271_v44, %v1140_v42  ;;  %v1141_v51 = vmul.f32 %v1784_v37, %v686_v48  ;;  %v1142_v57 = vmul.f32 %v1785_v22, %v690_v47  ;;  %v1793_v37 = vunpack.c.h.bf16 %v2035_v7  ;;  %v2039_v42 = vld [vmem:[%s2727_s17 + $0x90] sm:$0xff]  }
 0x13a   : > { %988 = vbcast.lane.b32.xlu1 %v2818_v20, 256  ;;  %929 = vbcast.lane.b32.xlu0 %v2809_v19, 272  ;;  %v1809_v22 = vunpack.c.h.bf16 %v2039_v42  ;;  %v1129_v53 = vmul.f32 %v1760_v36, %v2784_v34 }
 0x13b   : > { %v1273_v58 = vadd.f32 %v1272_v50, %v1141_v51  ;;  %v1808_v50 = vunpack.c.l.bf16 %v2039_v42  ;;  %v2040_v51 = vld [vmem:[%s2727_s17 + $0x98] sm:$0xff]  }
 0x13c   : > { %v698_v55 = vpop.permute.xlu1 %697  ;;  %v694_v21 = vpop.permute.xlu0 %693  ;;  %v1812_v61 = vunpack.c.l.bf16 %v2040_v51  ;;  %v1813_v34 = vunpack.c.h.bf16 %v2040_v51 }
 0x13d   : > { %v1274_v5 = vadd.f32 %v1273_v58, %v1142_v57  ;;  %v1143_v6 = vmul.f32 %v1788_v59, %v694_v21  ;;  %v1144_v14 = vmul.f32 %v1789_v2, %v698_v55  ;;  %v1796_v55 = vunpack.c.l.bf16 %v2036_v43  ;;  %v2028_v21 = vld [vmem:[%s2727_s17 + $0x38] sm:$0xff]  }
 0x13e   : > { %1055 = vbcast.lane.b32.xlu1 %v2825_v52, 256  ;;  %992 = vbcast.lane.b32.xlu0 %v2818_v20, 264  ;;  %v1130_v57 = vmul.f32 %v1761_v27, %v2782_v33  ;;  %v1256_v58 = vadd.f32 %v1255_v45, %v1129_v53  ;;  %v1797_v2 = vunpack.c.h.bf16 %v2036_v43  ;;  %v1765_v33 = vunpack.c.h.bf16 %v2028_v21 }
 0x13f   : > { %v1275_v15 = vadd.f32 %v1274_v5, %v1143_v6 }
 0x140   : > { %v706_v63 = vpop.permute.xlu1 %705  ;;  %v702_v0 = vpop.permute.xlu0 %701  ;;  %v1257_v8 = vadd.f32 %v1256_v58, %v1130_v57  ;;  %v2045_v57 = vld [vmem:[%s2727_s17 + $0xc0] sm:$0xff]  }
 0x141   : > { %v1276_v38 = vadd.f32 %v1275_v15, %v1144_v14  ;;  %v1145_v39 = vmul.f32 %v1792_v16, %v702_v0  ;;  %v1146_v4 = vmul.f32 %v1793_v37, %v706_v63  ;;  %v1764_v63 = vunpack.c.l.bf16 %v2028_v21 }
 0x142   : > { %996 = vbcast.lane.b32.xlu1 %v2818_v20, 272  ;;  %1059 = vbcast.lane.b32.xlu0 %v2825_v52, 264  ;;  %v1816_v16 = vunpack.c.l.bf16 %v2041_v24 }
 0x143   : > { %v1277_v54 = vadd.f32 %v1276_v38, %v1145_v39  ;;  %v1131_v17 = vmul.f32 %v1764_v63, %v2791_v41  ;;  %v1820_v41 = vunpack.c.l.bf16 %v2042_v18 }
 0x144   : > { %v2837_v10 = vpop.permute.xlu1 %713  ;;  %v710_v23 = vpop.permute.xlu0 %709 }
 0x145   : > { %v1278_v5 = vadd.f32 %v1277_v54, %v1146_v4  ;;  %v1147_v6 = vmul.f32 %v1796_v55, %v710_v23  ;;  %v1148_v23 = vmul.f32 %v1797_v2, %v2837_v10  ;;  %v2043_v10 = vld [vmem:[%s2727_s17 + $0xb0] sm:$0xff]   ;;  %v1832_v2 = vunpack.c.l.bf16 %v2045_v57 }
 0x146   : > { %1063 = vbcast.lane.b32.xlu1 %v2825_v52, 272  ;;  %933 = vbcast.lane.b32.xlu0 %v2809_v19, 280 }
 0x147   : > { %v1279_v25 = vadd.f32 %v1278_v5, %v1147_v6  ;;  %v2046_v5 = vld [vmem:[%s2727_s17 + $0xc8] sm:$0xff]  }
 0x148   : > { %v725_v29 = vpop.permute.xlu1 %724  ;;  %v721_v30 = vpop.permute.xlu0 %720 }
 0x149   : > { %v1150_v31 = vmul.f32 %v1801_v11, %v725_v29  ;;  %v1149_v32 = vmul.f32 %v1800_v12, %v721_v30  ;;  %v1817_v12 = vunpack.c.h.bf16 %v2041_v24  ;;  %v1132_v29 = vmul.f32 %v1765_v33, %v2789_v40 }
 0x14a   : > { %937 = vbcast.lane.b32.xlu1 %v2809_v19, 288  ;;  %1000 = vbcast.lane.b32.xlu0 %v2818_v20, 280  ;;  %v1258_v30 = vadd.f32 %v1257_v8, %v1131_v17  ;;  %v1280_v38 = vadd.f32 %v1279_v25, %v1148_v23  ;;  %v1825_v40 = vunpack.c.h.bf16 %v2043_v10 }
 0x14b   : > { %v1287_v44 = vadd.f32 %v1150_v31, %v1149_v32 }
 0x14c   : > { %v733_v46 = vpop.permute.xlu1 %732  ;;  %v729_v47 = vpop.permute.xlu0 %728  ;;  %v1259_v42 = vadd.f32 %v1258_v30, %v1132_v29 }
 0x14d   : > { %v1152_v48 = vmul.f32 %v1805_v35, %v733_v46  ;;  %v1151_v49 = vmul.f32 %v1804_v28, %v729_v47  ;;  %v1821_v35 = vunpack.c.h.bf16 %v2042_v18  ;;  %v1824_v47 = vunpack.c.l.bf16 %v2043_v10 }
 0x14e   : > { %1004 = vbcast.lane.b32.xlu1 %v2818_v20, 288  ;;  %1067 = vbcast.lane.b32.xlu0 %v2825_v52, 280 }
 0x14f   : > { %v1288_v56 = vadd.f32 %v1287_v44, %v1151_v49  ;;  %v2044_v49 = vld [vmem:[%s2727_s17 + $0xb8] sm:$0xff]  }
 0x150   : > { %v741_v59 = vpop.permute.xlu1 %740  ;;  %v737_v60 = vpop.permute.xlu0 %736  ;;  %v1829_v4 = vunpack.c.h.bf16 %v2044_v49 }
 0x151   : > { %v1154_v62 = vmul.f32 %v1809_v22, %v741_v59  ;;  %v1289_v0 = vadd.f32 %v1288_v56, %v1152_v48  ;;  %v1153_v1 = vmul.f32 %v1808_v50, %v737_v60  ;;  %v1281_v48 = vrot.slane %v1280_v38, 4 }
 0x152   : > { %1071 = vbcast.lane.b32.xlu1 %v2825_v52, 288  ;;  %941 = vbcast.lane.b32.xlu0 %v2809_v19, 296  ;;  %v1260_v50 = vrot.slane %v1259_v42, 4  ;;  %v1828_v56 = vunpack.c.l.bf16 %v2044_v49 }
 0x153   : > { %v1290_v7 = vadd.f32 %v1289_v0, %v1153_v1  ;;  %v1282_v58 = vadd.f32 %v1281_v48, %v1280_v38  ;;  %v1833_v0 = vunpack.c.h.bf16 %v2045_v57 }
 0x154   : > { %v749_v9 = vpop.permute.xlu1 %748  ;;  %v745_v11 = vpop.permute.xlu0 %744  ;;  %v1261_v60 = vadd.f32 %v1260_v50, %v1259_v42 }
 0x155   : > { %v1156_v13 = vmul.f32 %v1813_v34, %v749_v9  ;;  %v1291_v14 = vadd.f32 %v1290_v7, %v1154_v62  ;;  %v1155_v15 = vmul.f32 %v1812_v61, %v745_v11  ;;  %v1283_v6 = vrot.slane %v1282_v58, 2 }
 0x156   : > { %945 = vbcast.lane.b32.xlu1 %v2809_v19, 304  ;;  %1008 = vbcast.lane.b32.xlu0 %v2818_v20, 296  ;;  %v1262_v7 = vrot.slane %v1261_v60, 2  ;;  %v1836_v9 = vunpack.c.l.bf16 %v2046_v5 }
 0x157   : > { %v1292_v26 = vadd.f32 %v1291_v14, %v1155_v15  ;;  %v1837_v14 = vunpack.c.h.bf16 %v2046_v5  ;;  %v2047_v15 = vld [vmem:[%s2727_s17 + $0xd0] sm:$0xff]  }
 0x158   : > { %v757_v31 = vpop.permute.xlu1 %756  ;;  %v753_v32 = vpop.permute.xlu0 %752  ;;  %v1263_v25 = vadd.f32 %v1262_v7, %v1261_v60  ;;  %v1840_v29 = vunpack.c.l.bf16 %v2047_v15  ;;  %v2051_v5 = vld [vmem:[%s2727_s17 + $0xf0] sm:$0xff]  }
 0x159   : > { %v1158_v28 = vmul.f32 %v1817_v12, %v757_v31  ;;  %v1293_v36 = vadd.f32 %v1292_v26, %v1156_v13  ;;  %v1157_v37 = vmul.f32 %v1816_v16, %v753_v32  ;;  %v1284_v16 = vadd.f32 %v1283_v6, %v1282_v58  ;;  %v2050_v58 = vld [vmem:[%s2727_s17 + $0xe8] sm:$0xff]  }
 0x15a   : > { %1012 = vbcast.lane.b32.xlu1 %v2818_v20, 304  ;;  %1075 = vbcast.lane.b32.xlu0 %v2825_v52, 296  ;;  %v1264_v38 = vrot.slane %v1263_v25, 1 }
 0x15b   : > { %v1294_v39 = vadd.f32 %v1293_v36, %v1157_v37  ;;  %v1285_v36 = vrot.slane %v1284_v16, 1 }
 0x15c   : > { %v765_v43 = vpop.permute.xlu1 %764  ;;  %v761_v44 = vpop.permute.xlu0 %760 }
 0x15d   : > { %v1160_v27 = vmul.f32 %v1821_v35, %v765_v43  ;;  %v1295_v45 = vadd.f32 %v1294_v39, %v1158_v28  ;;  %v1159_v46 = vmul.f32 %v1820_v41, %v761_v44  ;;  %v1841_v35 = vunpack.c.h.bf16 %v2047_v15  ;;  %v2048_v28 = vld [vmem:[%s2727_s17 + $0xd8] sm:$0xff]  }
 0x15e   : > { %1079 = vbcast.lane.b32.xlu1 %v2825_v52, 304  ;;  %949 = vbcast.lane.b32.xlu0 %v2809_v19, 312  ;;  %v1845_v42 = vunpack.c.h.bf16 %v2048_v28  ;;  %v1844_v43 = vunpack.c.l.bf16 %v2048_v28 }
 0x15f   : > { %v1296_v22 = vadd.f32 %v1295_v45, %v1159_v46  ;;  %v2049_v46 = vld [vmem:[%s2727_s17 + $0xe0] sm:$0xff]  }
 0x160   : > { %v773_v51 = vpop.permute.xlu1 %772  ;;  %v769_v53 = vpop.permute.xlu0 %768 }
 0x161   : > { %v1162_v54 = vmul.f32 %v1825_v40, %v773_v51  ;;  %v1297_v55 = vadd.f32 %v1296_v22, %v1160_v27  ;;  %v1161_v21 = vmul.f32 %v1824_v47, %v769_v53  ;;  %v1286_v47 = vadd.f32 %v1285_v36, %v1284_v16 }
 0x162   : > { %953 = vbcast.lane.b32.xlu1 %v2809_v19, 320  ;;  %1016 = vbcast.lane.b32.xlu0 %v2818_v20, 312  ;;  %v1265_v22 = vadd.f32 %v1264_v38, %v1263_v25  ;;  %v1849_v53 = vunpack.c.h.bf16 %v2049_v46  ;;  %v2054_v38 = vld [vmem:[%s2727_s17 + $0x108] sm:$0xff]  }
 0x163   : > { %v1298_v59 = vadd.f32 %v1297_v55, %v1161_v21 }
 0x164   : > { %v781_v61 = vpop.permute.xlu1 %780  ;;  %v777_v62 = vpop.permute.xlu0 %776  ;;  %v1422_v57 = vsel %vm1421_vm1, %v1286_v47, %v1265_v22 }
 0x165   : > { %v1164_v1 = vmul.f32 %v1829_v4, %v781_v61  ;;  %v1299_v34 = vadd.f32 %v1298_v59, %v1162_v54  ;;  %v1163_v63 = vmul.f32 %v1828_v56, %v777_v62  ;;  %v1848_v4 = vunpack.c.l.bf16 %v2049_v46  ;;  %v2055_v46 = vld [vmem:[%s2727_s17 + $0x110] sm:$0xff]  }
 0x166   : > { %1020 = vbcast.lane.b32.xlu1 %v2818_v20, 320  ;;  %1083 = vbcast.lane.b32.xlu0 %v2825_v52, 312 }
 0x167   : > { %v1300_v24 = vadd.f32 %v1299_v34, %v1163_v63 }
 0x168   : > { %v792_v33 = vpop.permute.xlu1 %791  ;;  %v788_v8 = vpop.permute.xlu0 %787 }
 0x169   : > { %v1301_v11 = vadd.f32 %v1300_v24, %v1164_v1  ;;  %v1166_v12 = vmul.f32 %v1833_v0, %v792_v33  ;;  %v1165_v13 = vmul.f32 %v1832_v2, %v788_v8  ;;  %v1853_v0 = vunpack.c.h.bf16 %v2050_v58 }
 0x16a   : > { %1087 = vbcast.lane.b32.xlu1 %v2825_v52, 320  ;;  %957 = vbcast.lane.b32.xlu0 %v2809_v19, 328  ;;  %v1852_v2 = vunpack.c.l.bf16 %v2050_v58  ;;  %v1857_v33 = vunpack.c.h.bf16 %v2051_v5 }
 0x16b   : > { %v1302_v17 = vrot.slane %v1301_v11, 4  ;;  %v1308_v23 = vadd.f32 %v1166_v12, %v1165_v13  ;;  %v1856_v12 = vunpack.c.l.bf16 %v2051_v5  ;;  %v2052_v13 = vld [vmem:[%s2727_s17 + $0xf8] sm:$0xff]  }
 0x16c   : > { %v800_v18 = vpop.permute.xlu1 %799  ;;  %v796_v26 = vpop.permute.xlu0 %795 }
 0x16d   : > { %v1303_v30 = vadd.f32 %v1302_v17, %v1301_v11  ;;  %v1168_v31 = vmul.f32 %v1837_v14, %v800_v18  ;;  %v1167_v32 = vmul.f32 %v1836_v9, %v796_v26  ;;  %v1861_v17 = vunpack.c.h.bf16 %v2052_v13 }
 0x16e   : > { %961 = vbcast.lane.b32.xlu1 %v2809_v19, 336  ;;  %1024 = vbcast.lane.b32.xlu0 %v2818_v20, 328  ;;  %v1860_v26 = vunpack.c.l.bf16 %v2052_v13 }
 0x16f   : > { %v1304_v37 = vrot.slane %v1303_v30, 2  ;;  %v1309_v41 = vadd.f32 %v1308_v23, %v1167_v32 }
 0x170   : > { %v808_v10 = vpop.permute.xlu1 %807  ;;  %v804_v39 = vpop.permute.xlu0 %803 }
 0x171   : > { %v1305_v44 = vadd.f32 %v1304_v37, %v1303_v30  ;;  %v1170_v40 = vmul.f32 %v1841_v35, %v808_v10  ;;  %v1310_v27 = vadd.f32 %v1309_v41, %v1168_v31  ;;  %v1169_v45 = vmul.f32 %v1840_v29, %v804_v39  ;;  %v2053_v29 = vld [vmem:[%s2727_s17 + $0x100] sm:$0xff]  }
 0x172   : > { %1028 = vbcast.lane.b32.xlu1 %v2818_v20, 336  ;;  %1091 = vbcast.lane.b32.xlu0 %v2825_v52, 328  ;;  %v1865_v35 = vunpack.c.h.bf16 %v2053_v29  ;;  %v1864_v41 = vunpack.c.l.bf16 %v2053_v29 }
 0x173   : > { %v1306_v48 = vrot.slane %v1305_v44, 1  ;;  %v1311_v49 = vadd.f32 %v1310_v27, %v1169_v45  ;;  %v1869_v45 = vunpack.c.h.bf16 %v2054_v38 }
 0x174   : > { %v816_v50 = vpop.permute.xlu1 %815  ;;  %v812_v51 = vpop.permute.xlu0 %811 }
 0x175   : > { %v1307_v54 = vadd.f32 %v1306_v48, %v1305_v44  ;;  %v1172_v55 = vmul.f32 %v1845_v42, %v816_v50  ;;  %v1312_v21 = vadd.f32 %v1311_v49, %v1170_v40  ;;  %v1171_v56 = vmul.f32 %v1844_v43, %v812_v51 }
 0x176   : > { %1095 = vbcast.lane.b32.xlu1 %v2825_v52, 336  ;;  %965 = vbcast.lane.b32.xlu0 %v2809_v19, 344  ;;  %v1868_v43 = vunpack.c.l.bf16 %v2054_v38  ;;  %v1872_v50 = vunpack.c.l.bf16 %v2055_v46 }
 0x177   : > { %v2888_v59 = vsel %vm1423_vm2, %v1307_v54, %v1422_v57  ;;  %v1313_v60 = vadd.f32 %v1312_v21, %v1171_v56  ;;  %v1873_v54 = vunpack.c.h.bf16 %v2055_v46 }
 0x178   : > { %v824_v61 = vpop.permute.xlu1 %823  ;;  %v820_v62 = vpop.permute.xlu0 %819 }
 0x179   : > { %v1174_v1 = vmul.f32 %v1849_v53, %v824_v61  ;;  %v1314_v34 = vadd.f32 %v1313_v60, %v1172_v55  ;;  %v1173_v63 = vmul.f32 %v1848_v4, %v820_v62  ;;  %v2056_v55 = vld [vmem:[%s2727_s17 + $0x118] sm:$0xff]  }
 0x17a   : > { %969 = vbcast.lane.b32.xlu1 %v2809_v19, 352  ;;  %1032 = vbcast.lane.b32.xlu0 %v2818_v20, 344  ;;  %v1877_v60 = vunpack.c.h.bf16 %v2056_v55  ;;  %v1876_v61 = vunpack.c.l.bf16 %v2056_v55 }
 0x17b   : > { %v1315_v6 = vadd.f32 %v1314_v34, %v1173_v63  ;;  %v2057_v63 = vld [vmem:[%s2727_s17 + $0x120] sm:$0xff]  }
 0x17c   : > { %v832_v24 = vpop.permute.xlu1 %831  ;;  %v828_v7 = vpop.permute.xlu0 %827 }
 0x17d   : > { %v1176_v8 = vmul.f32 %v1853_v0, %v832_v24  ;;  %v1316_v9 = vadd.f32 %v1315_v6, %v1174_v1  ;;  %v1175_v11 = vmul.f32 %v1852_v2, %v828_v7  ;;  %v1881_v24 = vunpack.c.h.bf16 %v2057_v63 }
 0x17e   : > { %1036 = vbcast.lane.b32.xlu1 %v2818_v20, 352  ;;  %1099 = vbcast.lane.b32.xlu0 %v2825_v52, 344  ;;  %v1880_v7 = vunpack.c.l.bf16 %v2057_v63 }
 0x17f   : > { %v1317_v14 = vadd.f32 %v1316_v9, %v1175_v11 }
 0x180   : > { %v840_v15 = vpop.permute.xlu1 %839  ;;  %v836_v16 = vpop.permute.xlu0 %835 }
 0x181   : > { %v1178_v23 = vmul.f32 %v1857_v33, %v840_v15  ;;  %v1318_v25 = vadd.f32 %v1317_v14, %v1176_v8  ;;  %v1177_v18 = vmul.f32 %v1856_v12, %v836_v16  ;;  %v2058_v12 = vld [vmem:[%s2727_s17 + $0x128] sm:$0xff]  }
 0x182   : > { %1103 = vbcast.lane.b32.xlu1 %v2825_v52, 352  ;;  %973 = vbcast.lane.b32.xlu0 %v2809_v19, 360 }
 0x183   : > { %v1319_v30 = vadd.f32 %v1318_v25, %v1177_v18  ;;  %v1884_v25 = vunpack.c.l.bf16 %v2058_v12  ;;  %v2059_v18 = vld [vmem:[%s2727_s17 + $0x130] sm:$0xff]  }
 0x184   : > { %v848_v31 = vpop.permute.xlu1 %847  ;;  %v844_v32 = vpop.permute.xlu0 %843 }
 0x185   : > { %v1180_v28 = vmul.f32 %v1861_v17, %v848_v31  ;;  %v1320_v36 = vadd.f32 %v1319_v30, %v1178_v23  ;;  %v1179_v37 = vmul.f32 %v1860_v26, %v844_v32  ;;  %v1889_v31 = vunpack.c.h.bf16 %v2059_v18 }
 0x186   : > { %977 = vbcast.lane.b32.xlu1 %v2809_v19, 368  ;;  %1040 = vbcast.lane.b32.xlu0 %v2818_v20, 360 }
 0x187   : > { %v1321_v10 = vadd.f32 %v1320_v36, %v1179_v37  ;;  %v1888_v36 = vunpack.c.l.bf16 %v2059_v18  ;;  %v2060_v37 = vld [vmem:[%s2727_s17 + $0x138] sm:$0xff]   ;;  %v2077_v18 = vld [vmem:[%s2727_s17 + $0x1c0] sm:$0xff]  }
 0x188   : > { %v859_v39 = vpop.permute.xlu1 %858  ;;  %v855_v42 = vpop.permute.xlu0 %854 }
 0x189   : > { %v1322_v44 = vadd.f32 %v1321_v10, %v1180_v28  ;;  %v1182_v40 = vmul.f32 %v1865_v35, %v859_v39  ;;  %v1181_v27 = vmul.f32 %v1864_v41, %v855_v42  ;;  %v1893_v10 = vunpack.c.h.bf16 %v2060_v37 }
 0x18a   : > { %1044 = vbcast.lane.b32.xlu1 %v2818_v20, 368  ;;  %1107 = vbcast.lane.b32.xlu0 %v2825_v52, 360 }
 0x18b   : > { %v1323_v47 = vrot.slane %v1322_v44, 4  ;;  %v1329_v48 = vadd.f32 %v1182_v40, %v1181_v27 }
 0x18c   : > { %v867_v49 = vpop.permute.xlu1 %866  ;;  %v863_v22 = vpop.permute.xlu0 %862 }
 0x18d   : > { %v1324_v51 = vadd.f32 %v1323_v47, %v1322_v44  ;;  %v1184_v53 = vmul.f32 %v1869_v45, %v867_v49  ;;  %v1183_v4 = vmul.f32 %v1868_v43, %v863_v22  ;;  %v1892_v44 = vunpack.c.l.bf16 %v2060_v37 }
 0x18e   : > { %1111 = vbcast.lane.b32.xlu1 %v2825_v52, 368  ;;  %981 = vbcast.lane.b32.xlu0 %v2809_v19, 376 }
 0x18f   : > { %v1325_v21 = vrot.slane %v1324_v51, 2  ;;  %v1330_v56 = vadd.f32 %v1329_v48, %v1183_v4 }
 0x190   : > { %v875_v57 = vpop.permute.xlu1 %874  ;;  %v871_v58 = vpop.permute.xlu0 %870 }
 0x191   : > { %v1326_v62 = vadd.f32 %v1325_v21, %v1324_v51  ;;  %v1186_v0 = vmul.f32 %v1873_v54, %v875_v57  ;;  %v1331_v1 = vadd.f32 %v1330_v56, %v1184_v53  ;;  %v1185_v34 = vmul.f32 %v1872_v50, %v871_v58 }
 0x192   : > { %1115 = vbcast.lane.b32.xlu1 %v2825_v52, 376  ;;  %1048 = vbcast.lane.b32.xlu0 %v2818_v20, 376  ;;  %v1885_v20 = vunpack.c.h.bf16 %v2058_v12 }
 0x193   : > { %v1327_v2 = vrot.slane %v1326_v62, 1  ;;  %v1332_v5 = vadd.f32 %v1331_v1, %v1185_v34 }
 0x194   : > { %v883_v19 = vpop.permute.xlu1 %882  ;;  %v879_v6 = vpop.permute.xlu0 %878 }
 0x195   : > { %v1328_v33 = vadd.f32 %v1327_v2, %v1326_v62  ;;  %v1188_v8 = vmul.f32 %v1877_v60, %v883_v19  ;;  %v1333_v9 = vadd.f32 %v1332_v5, %v1186_v0  ;;  %v1187_v11 = vmul.f32 %v1876_v61, %v879_v6 }
 0x197   : > { %v1426_v13 = vsel %vm1425_vm3, %v1328_v33, %v2888_v59  ;;  %v1334_v14 = vadd.f32 %v1333_v9, %v1187_v11 }
 0x198   : > { %v891_v15 = vpop.permute.xlu1 %890  ;;  %v887_v52 = vpop.permute.xlu0 %886 }
 0x199   : > { %v1190_v16 = vmul.f32 %v1881_v24, %v891_v15  ;;  %v1335_v17 = vadd.f32 %v1334_v14, %v1188_v8  ;;  %v1189_v23 = vmul.f32 %v1880_v7, %v887_v52 }
 0x19b   : > { %v1336_v26 = vadd.f32 %v1335_v17, %v1189_v23  ;;  %v2062_v23 = vld [vmem:[%s2727_s17 + $0x148] sm:$0xff]  }
 0x19c   : > { %v899_v29 = vpop.permute.xlu1 %898  ;;  %v895_v30 = vpop.permute.xlu0 %894 }
 0x19d   : > { %v1192_v32 = vmul.f32 %v1885_v20, %v899_v29  ;;  %v1337_v35 = vadd.f32 %v1336_v26, %v1190_v16  ;;  %v1191_v28 = vmul.f32 %v1884_v25, %v895_v30  ;;  %v2061_v20 = vld [vmem:[%s2727_s17 + $0x140] sm:$0xff]   ;;  %v2070_v26 = vld [vmem:[%s2727_s17 + $0x188] sm:$0xff]  }
 0x19e   : > { %v2069_v25 = vld [vmem:[%s2727_s17 + $0x180] sm:$0xff]   ;;  %v1897_v29 = vunpack.c.h.bf16 %v2061_v20  ;;  %v1896_v30 = vunpack.c.l.bf16 %v2061_v20 }
 0x19f   : > { %v1338_v59 = vadd.f32 %v1337_v35, %v1191_v28  ;;  %v1900_v35 = vunpack.c.l.bf16 %v2062_v23  ;;  %v2978_v28 = vld [vmem:[%s2727_s17 + $0x190] sm:$0xff]  }
 0x1a0   : > { %v907_v41 = vpop.permute.xlu1 %906  ;;  %v903_v38 = vpop.permute.xlu0 %902 }
 0x1a1   : > { %v1194_v39 = vmul.f32 %v1889_v31, %v907_v41  ;;  %v1339_v42 = vadd.f32 %v1338_v59, %v1192_v32  ;;  %v1193_v43 = vmul.f32 %v1888_v36, %v903_v38  ;;  %v2078_v31 = vld [vmem:[%s2727_s17 + $0x1c8] sm:$0xff]   ;;  %v2063_v32 = vld [vmem:[%s2727_s17 + $0x150] sm:$0xff]   ;;  %v1928_v59 = vunpack.c.l.bf16 %v2069_v25 }
 0x1a2   : > { %v1960_v41 = vunpack.c.l.bf16 %v2077_v18  ;;  %v1929_v38 = vunpack.c.h.bf16 %v2069_v25  ;;  %v3008_v25 = vld [vmem:[%s2727_s17 + $0x160] sm:$0xff]  }
 0x1a3   : > { %v1340_v40 = vadd.f32 %v1339_v42, %v1193_v43  ;;  %v2988_v42 = vld [vmem:[%s2727_s17 + $0x158] sm:$0xff]   ;;  %v1961_v43 = vunpack.c.h.bf16 %v2077_v18  ;;  %v3011_v18 = vld [vmem:[%s2727_s17 + $0x1a0] sm:$0xff]  }
 0x1a4   : > { %v915_v27 = vpop.permute.xlu1 %914  ;;  %v911_v45 = vpop.permute.xlu0 %910 }
 0x1a5   : > { %v1196_v46 = vmul.f32 %v1893_v10, %v915_v27  ;;  %v1341_v47 = vadd.f32 %v1340_v40, %v1194_v39  ;;  %v1195_v48 = vmul.f32 %v1892_v44, %v911_v45  ;;  %v1932_v10 = vunpack.c.l.bf16 %v2070_v26  ;;  %v2985_v39 = vld [vmem:[%s2727_s17 + $0x1d0] sm:$0xff]   ;;  %v2991_v45 = vld [vmem:[%s2727_s17 + $0x198] sm:$0xff]  }
 0x1a6   : > { %v1964_v44 = vunpack.c.l.bf16 %v2078_v31  ;;  %v1901_v40 = vunpack.c.h.bf16 %v2062_v23  ;;  %v1904_v27 = vunpack.c.l.bf16 %v2063_v32  ;;  %v1940_v20 = vunpack.c.l.bf16 %v2991_v45 }
 0x1a7   : > { %v1342_v49 = vadd.f32 %v1341_v47, %v1195_v48  ;;  %v1933_v48 = vunpack.c.h.bf16 %v2070_v26  ;;  %v1969_v23 = vunpack.c.h.bf16 %v2985_v39 }
 0x1a8   : > { %v926_v22 = vpop.permute.xlu1 %925  ;;  %v922_v50 = vpop.permute.xlu0 %921 }
 0x1a9   : > { %v1343_v51 = vadd.f32 %v1342_v49, %v1196_v46  ;;  %v1198_v46 = vmul.f32 %v1897_v29, %v926_v22  ;;  %v1197_v47 = vmul.f32 %v1896_v30, %v922_v50  ;;  %v1936_v49 = vunpack.c.l.bf16 %v2978_v28 }
 0x1aa   : > { %v1937_v50 = vunpack.c.h.bf16 %v2978_v28 }
 0x1ab   : > { %v1344_v53 = vrot.slane %v1343_v51, 4 }
 0x1ac   : > { %v2915_v4 = vpop.permute.xlu1 %988  ;;  %v2917_v54 = vpop.permute.xlu0 %929 }
 0x1ad   : > { %v1345_v55 = vadd.f32 %v1344_v53, %v1343_v51  ;;  %v2995_v51 = vld [vmem:[%s2727_s17 + $0x1d8] sm:$0xff]   ;;  %v1965_v53 = vunpack.c.h.bf16 %v2078_v31  ;;  %v1199_v22 = vmul.f32 %v1900_v35, %v2917_v54  ;;  %v1213_v26 = vmul.f32 %v1928_v59, %v2915_v4 }
 0x1ae   : > { %v1972_v30 = vunpack.c.l.bf16 %v2995_v51  ;;  %v1909_v31 = vunpack.c.h.bf16 %v2988_v42  ;;  %v1350_v54 = vadd.f32 %v1198_v46, %v1197_v47  ;;  %v1912_v4 = vunpack.c.l.bf16 %v3008_v25 }
 0x1af   : > { %v1346_v21 = vrot.slane %v1345_v55, 2  ;;  %v1944_v59 = vunpack.c.l.bf16 %v3011_v18 }
 0x1b0   : > { %v2919_v56 = vpop.permute.xlu1 %1055  ;;  %v2921_v57 = vpop.permute.xlu0 %992 }
 0x1b1   : > { %v1347_v58 = vadd.f32 %v1346_v21, %v1345_v55  ;;  %1439 = vadd.xlane.f32.xlu0 %v2744_v3  ;;  %v1968_v55 = vunpack.c.l.bf16 %v2985_v39  ;;  %v1905_v21 = vunpack.c.h.bf16 %v2063_v32  ;;  %v1214_v29 = vmul.f32 %v1929_v38, %v2921_v57  ;;  %v3021_v39 = vld [vmem:[%s2727_s17 + $0x1e0] sm:$0xff]  }
 0x1b2   : > { %v1229_v32 = vmul.f32 %v1960_v41, %v2919_v56  ;;  %v1941_v57 = vunpack.c.h.bf16 %v2991_v45  ;;  %v1351_v56 = vadd.f32 %v1350_v54, %v1199_v22  ;;  %v1973_v41 = vunpack.c.h.bf16 %v2995_v51 }
 0x1b3   : > { %v1348_v60 = vrot.slane %v1347_v58, 1  ;;  %v1913_v45 = vunpack.c.h.bf16 %v3008_v25 }
 0x1b4   : > { %v2924_v61 = vpop.permute.xlu1 %996  ;;  %v2926_v62 = vpop.permute.xlu0 %1059 }
 0x1b5   : > { %v1349_v0 = vadd.f32 %v1348_v60, %v1347_v58  ;;  %v1908_v58 = vunpack.c.l.bf16 %v2988_v42  ;;  %v1230_v35 = vmul.f32 %v1961_v43, %v2926_v62  ;;  %v3035_v43 = vld [vmem:[%s2727_s17 + $0x168] sm:$0xff]  }
 0x1b6   : > { %v1916_v51 = vunpack.c.l.bf16 %v3035_v43 }
 0x1b7   : > { %v2928_v1 = vsel %vm1427_vm4, %v1349_v0, %v1426_v13  ;;  %v1392_v46 = vadd.f32 %v1230_v35, %v1229_v32 }
 0x1b8   : > { %3194 = vst [vmem:[#allocation25_spill] sm:$0xff] %v2928_v1  ;;  %v2930_v34 = vpop.permute.xlu1 %1063  ;;  %v2932_v63 = vpop.permute.xlu0 %933  ;;  %v1215_v1 = vmul.f32 %v1932_v10, %v2924_v61  ;;  %v1371_v61 = vadd.f32 %v1214_v29, %v1213_v26 }
 0x1b9   : > { %v1200_v28 = vmul.f32 %v1901_v40, %v2932_v63  ;;  %v1231_v62 = vmul.f32 %v1964_v44, %v2930_v34  ;;  %v1976_v40 = vunpack.c.l.bf16 %v3021_v39  ;;  %v3043_v44 = vld [vmem:[%s2727_s17 + $0x1a8] sm:$0xff]  }
 0x1bb   : > { %v1352_v47 = vadd.f32 %v1351_v56, %v1200_v28  ;;  %v1393_v26 = vadd.f32 %v1392_v46, %v1231_v62  ;;  %v2067_v28 = vld [vmem:[%s2727_s17 + $0x170] sm:$0xff]  }
 0x1bc   : > { %v2934_v2 = vpop.permute.xlu1 %937  ;;  %v2936_v5 = vpop.permute.xlu0 %1000  ;;  %v2083_v46 = vld [vmem:[%s2727_s17 + $0x1f0] sm:$0xff]  }
 0x1bd   : > { %v1201_v63 = vmul.f32 %v1904_v27, %v2934_v2  ;;  %v1216_v10 = vmul.f32 %v1933_v48, %v2936_v5  ;;  %v1372_v2 = vadd.f32 %v1371_v61, %v1215_v1  ;;  %v1945_v5 = vunpack.c.h.bf16 %v3011_v18 }
 0x1bf   : > { %v1353_v29 = vadd.f32 %v1352_v47, %v1201_v63  ;;  %v1373_v1 = vadd.f32 %v1372_v2, %v1216_v10  ;;  %v2068_v2 = vld [vmem:[%s2727_s17 + $0x178] sm:$0xff]  }
 0x1c0   : > { %v2938_v19 = vpop.permute.xlu1 %1004  ;;  %v2940_v3 = vpop.permute.xlu0 %1067 }
 0x1c1   : > { %v1232_v22 = vmul.f32 %v1965_v53, %v2940_v3  ;;  %v1217_v27 = vmul.f32 %v1936_v49, %v2938_v19  ;;  %v3055_v53 = vld [vmem:[%s2727_s17 + $0x1e8] sm:$0xff]   ;;  %v1948_v49 = vunpack.c.l.bf16 %v3043_v44 }
 0x1c3   : > { %v1394_v18 = vadd.f32 %v1393_v26, %v1232_v22 }
 0x1c4   : > { %v2942_v6 = vpop.permute.xlu1 %1071  ;;  %v2944_v24 = vpop.permute.xlu0 %941 }
 0x1c5   : > { %v1202_v34 = vmul.f32 %v1905_v21, %v2944_v24  ;;  %v1233_v3 = vmul.f32 %v1968_v55, %v2942_v6  ;;  %v1977_v21 = vunpack.c.h.bf16 %v3021_v39  ;;  %v1374_v6 = vadd.f32 %v1373_v1, %v1217_v27 }
 0x1c6   : > { %v1980_v55 = vunpack.c.l.bf16 %v3055_v53 }
 0x1c7   : > { %v1354_v54 = vadd.f32 %v1353_v29, %v1202_v34  ;;  %v1395_v56 = vadd.f32 %v1394_v18, %v1233_v3  ;;  %v2076_v29 = vld [vmem:[%s2727_s17 + $0x1b8] sm:$0xff]  }
 0x1c8   : > { %v2946_v7 = vpop.permute.xlu1 %945  ;;  %v2948_v33 = vpop.permute.xlu0 %1008 }
 0x1c9   : > { %v1203_v24 = vmul.f32 %v1908_v58, %v2946_v7  ;;  %v1218_v19 = vmul.f32 %v1937_v50, %v2948_v33  ;;  %v1917_v58 = vunpack.c.h.bf16 %v3035_v43 }
 0x1cb   : > { %v1355_v39 = vadd.f32 %v1354_v54, %v1203_v24 }
 0x1cc   : > { %v2950_v8 = vpop.permute.xlu1 %1012  ;;  %v2952_v9 = vpop.permute.xlu0 %1075 }
 0x1cd   : > { %v1234_v32 = vmul.f32 %v1969_v23, %v2952_v9  ;;  %v1219_v7 = vmul.f32 %v1940_v20, %v2950_v8  ;;  %v2075_v9 = vld [vmem:[%s2727_s17 + $0x1b0] sm:$0xff]   ;;  %v1375_v23 = vadd.f32 %v1374_v6, %v1218_v19  ;;  %v1949_v8 = vunpack.c.h.bf16 %v3043_v44  ;;  %v2084_v19 = vld [vmem:[%s2727_s17 + $0x1f8] sm:$0xff]  }
 0x1cf   : > { %v1396_v20 = vadd.f32 %v1395_v56, %v1234_v32  ;;  %v1376_v47 = vadd.f32 %v1375_v23, %v1219_v7  ;;  %v1925_v56 = vunpack.c.h.bf16 %v2068_v2 }
 0x1d0   : > { %v2954_v11 = vpop.permute.xlu1 %1079  ;;  %v2956_v12 = vpop.permute.xlu0 %949 }
 0x1d1   : > { %v1204_v35 = vmul.f32 %v1909_v31, %v2956_v12  ;;  %v1235_v62 = vmul.f32 %v1972_v30, %v2954_v11  ;;  %v1920_v31 = vunpack.c.l.bf16 %v2067_v28  ;;  %v1952_v30 = vunpack.c.l.bf16 %v2075_v9 }
 0x1d3   : > { %v1356_v61 = vadd.f32 %v1355_v39, %v1204_v35 }
 0x1d4   : > { %v2958_v13 = vpop.permute.xlu1 %953  ;;  %v2960_v14 = vpop.permute.xlu0 %1016 }
 0x1d5   : > { %v1205_v63 = vmul.f32 %v1912_v4, %v2958_v13  ;;  %v1220_v12 = vmul.f32 %v1941_v57, %v2960_v14  ;;  %v1981_v13 = vunpack.c.h.bf16 %v3055_v53  ;;  %v1397_v57 = vadd.f32 %v1396_v20, %v1235_v62 }
 0x1d6   : > { %v1989_v20 = vunpack.c.h.bf16 %v2084_v19 }
 0x1d7   : > { %v1357_v22 = vadd.f32 %v1356_v61, %v1205_v63  ;;  %v1957_v61 = vunpack.c.h.bf16 %v2076_v29 }
 0x1d8   : > { %v2962_v15 = vpop.permute.xlu1 %1020  ;;  %v2964_v52 = vpop.permute.xlu0 %1083 }
 0x1d9   : > { %v1236_v43 = vmul.f32 %v1973_v41, %v2964_v52  ;;  %v1221_v11 = vmul.f32 %v1944_v59, %v2962_v15  ;;  %v1377_v52 = vadd.f32 %v1376_v47, %v1220_v12  ;;  %v1984_v41 = vunpack.c.l.bf16 %v2083_v46 }
 0x1db   : > { %v1398_v15 = vadd.f32 %v1397_v57, %v1236_v43  ;;  %v1378_v3 = vadd.f32 %v1377_v52, %v1221_v11 }
 0x1dc   : > { %v2967_v16 = vpop.permute.xlu1 %1087  ;;  %v2969_v17 = vpop.permute.xlu0 %957 }
 0x1dd   : > { %v1206_v10 = vmul.f32 %v1913_v45, %v2969_v17  ;;  %v1237_v34 = vmul.f32 %v1976_v40, %v2967_v16  ;;  %v1921_v45 = vunpack.c.h.bf16 %v2067_v28  ;;  %v1924_v16 = vunpack.c.l.bf16 %v2068_v2 }
 0x1df   : > { %v1358_v59 = vadd.f32 %v1357_v22, %v1206_v10  ;;  %v1399_v53 = vadd.f32 %v1398_v15, %v1237_v34 }
 0x1e0   : > { %v2980_v36 = vpop.permute.xlu1 %961  ;;  %v2982_v37 = vpop.permute.xlu0 %1024 }
 0x1e1   : > { %v1207_v44 = vmul.f32 %v1916_v51, %v2980_v36  ;;  %v1222_v17 = vmul.f32 %v1945_v5, %v2982_v37  ;;  %v1953_v36 = vunpack.c.h.bf16 %v2075_v9 }
 0x1e3   : > { %v1359_v1 = vadd.f32 %v1358_v59, %v1207_v44  ;;  %v1379_v18 = vadd.f32 %v1378_v3, %v1222_v17 }
 0x1e4   : > { %v2999_v60 = vpop.permute.xlu1 %1028  ;;  %v3001_v0 = vpop.permute.xlu0 %1091 }
 0x1e5   : > { %v1238_v27 = vmul.f32 %v1977_v21, %v3001_v0  ;;  %v1223_v24 = vmul.f32 %v1948_v49, %v2999_v60  ;;  %v1956_v21 = vunpack.c.l.bf16 %v2076_v29 }
 0x1e7   : > { %v1400_v54 = vadd.f32 %v1399_v53, %v1238_v27  ;;  %v1380_v49 = vadd.f32 %v1379_v18, %v1223_v24  ;;  %v580_v18 = vld [vmem:[#allocation2] sm:$0xff] }
 0x1e8   : > { %v3027_v38 = vpop.permute.xlu1 %1095  ;;  %v3029_v42 = vpop.permute.xlu0 %965 }
 0x1e9   : > { %v1208_v26 = vmul.f32 %v1917_v58, %v3029_v42  ;;  %v1239_v37 = vmul.f32 %v1980_v55, %v3027_v38  ;;  %v1985_v42 = vunpack.c.h.bf16 %v2083_v46  ;;  %v1988_v58 = vunpack.c.l.bf16 %v2084_v19 }
 0x1eb   : > { %v1360_v32 = vadd.f32 %v1359_v1, %v1208_v26  ;;  %v1401_v39 = vadd.f32 %v1400_v54, %v1239_v37  ;;  %v1438_v54 = vld [vmem:[#allocation3] sm:$0xff] }
 0x1ec   : > { %v3048_v48 = vpop.permute.xlu1 %969  ;;  %v3050_v25 = vpop.permute.xlu0 %1032 }
 0x1ed   : > { %v1209_v5 = vmul.f32 %v1920_v31, %v3048_v48  ;;  %v1224_v0 = vmul.f32 %v1949_v8, %v3050_v25 }
 0x1ef   : > { %v1361_v38 = vadd.f32 %v1360_v32, %v1209_v5  ;;  %v1381_v62 = vadd.f32 %v1380_v49, %v1224_v0  ;;  %v3195_v5 = vld [vmem:[#allocation25_spill] sm:$0xff]  ;;  %v1991_v49 = vld [vmem:[#allocation9] sm:$0xff] (!%p1727_p13)  }
 0x1f0   : > { %v1037_v33 = vpop.permute.xlu1 %1036  ;;  %v1100_v50 = vpop.permute.xlu0 %1099 }
 0x1f1   : > { %v1240_v35 = vmul.f32 %v1981_v13, %v1100_v50  ;;  %v1225_v28 = vmul.f32 %v1952_v30, %v1037_v33 }
 0x1f3   : > { %v1402_v9 = vadd.f32 %v1401_v39, %v1240_v35  ;;  %v1382_v12 = vadd.f32 %v1381_v62, %v1225_v28  ;;  %v2502_v28 = vmov (!%p1727_p13), 0   ;;  %v2086_v39 = vld [vmem:[#allocation9 + $0x10] sm:$0xff] (!%p1727_p13)  }
 0x1f4   : > { %v1104_v4 = vpop.permute.xlu1 %1103  ;;  %v974_v14 = vpop.permute.xlu0 %973  ;;  %2298 = vset.pattern.permute.xlu0 (!%p1727_p13), %v2502_v28  ;;  %v2090_v62 = vld [vmem:[#allocation9 + $0x30] sm:$0xff] (!%p1727_p13)  }
 0x1f5   : > { %v1210_v60 = vmul.f32 %v1921_v45, %v974_v14  ;;  %v1241_v55 = vmul.f32 %v1984_v41, %v1104_v4 }
 0x1f7   : > { %v1362_v25 = vadd.f32 %v1361_v38, %v1210_v60  ;;  %v1403_v33 = vadd.f32 %v1402_v9, %v1241_v55  ;;  %v2087_v38 = vld [vmem:[#allocation9 + $0x18] sm:$0xff] (!%p1727_p13)   ;;  %v2088_v55 = vld [vmem:[#allocation9 + $0x20] sm:$0xff] (!%p1727_p13)  }
 0x1f8   : > { %v978_v40 = vpop.permute.xlu1 %977  ;;  %v1041_v51 = vpop.permute.xlu0 %1040 }
 0x1f9   : > { %v1211_v48 = vmul.f32 %v1924_v16, %v978_v40  ;;  %v1226_v63 = vmul.f32 %v1953_v36, %v1041_v51 }
 0x1fb   : > { %v1363_v43 = vadd.f32 %v1362_v25, %v1211_v48  ;;  %v1383_v47 = vadd.f32 %v1382_v12, %v1226_v63  ;;  %v2089_v48 = vld [vmem:[#allocation9 + $0x28] sm:$0xff] (!%p1727_p13)   ;;  %v2091_v63 = vld [vmem:[#allocation9 + $0x38] sm:$0xff] (!%p1727_p13)  }
 0x1fc   : > { %v1045_v6 = vpop.permute.xlu1 %1044  ;;  %v1108_v7 = vpop.permute.xlu0 %1107 }
 0x1fd   : > { %v1242_v23 = vmul.f32 %v1985_v42, %v1108_v7  ;;  %v1227_v31 = vmul.f32 %v1956_v21, %v1045_v6  ;;  %v2503_v7 = vmov (!%p1727_p13), 0.0|0.0  }
 0x1fe   : > { %2144 = vmatprep.subr.bf16.mxu0 (!%p1727_p13), %v2503_v7 }
 0x1ff   : > { %v1404_v11 = vadd.f32 %v1403_v33, %v1242_v23  ;;  %v1384_v13 = vadd.f32 %v1383_v47, %v1227_v31  ;;  %2146 = vmatpush3.bf16.msra.mxu0 (!%p1727_p13), %v1991_v49  ;;  %v1728_v31 = vld [vmem:[%s3162_s3] ss:$0 sm:$0xff] (!%p1727_p13) }
 0x200   : > { %v1112_v8 = vpop.permute.xlu1 %1111  ;;  %v982_v50 = vpop.permute.xlu0 %981  ;;  %2147 = vmatprep.subr.bf16.mxu0 (!%p1727_p13), %v2503_v7 }
 0x201   : > { %v1243_v10 = vmul.f32 %v1988_v58, %v1112_v8  ;;  %v1212_v46 = vmul.f32 %v1925_v56, %v982_v50  ;;  %v2085_v58 = vld [vmem:[#allocation9 + $0x8] sm:$0xff] (!%p1727_p13)   ;;  %v2505_v56 = vmov (!%p1727_p13), 0.0  }
 0x202   : > { %2141 = vmatprep.mubr.msk.f32.mxu0 (!%p1727_p13), %vm2504_vm9, %v2505_v56 }
 0x203   : > { %v1364_v30 = vadd.f32 %v1363_v43, %v1212_v46  ;;  %v1405_v57 = vadd.f32 %v1404_v11, %v1243_v10  ;;  %2149 = vmatpush3.bf16.msra.mxu0 (!%p1727_p13), %v2085_v58 }
 0x204   : > { %v1116_v4 = vpop.permute.xlu1 %1115  ;;  %v1049_v14 = vpop.permute.xlu0 %1048  ;;  %2150 = vmatprep.subr.bf16.mxu0 (!%p1727_p13), %v2503_v7 }
 0x205   : > { %v1365_v22 = vrot.slane %v1364_v30, 4  ;;  %v1244_v34 = vmul.f32 %v1989_v20, %v1116_v4  ;;  %v1228_v44 = vmul.f32 %v1957_v61, %v1049_v14 }
 0x207   : > { %v1366_v2 = vadd.f32 %v1365_v22, %v1364_v30  ;;  %v1406_v52 = vadd.f32 %v1405_v57, %v1244_v34  ;;  %v1385_v17 = vadd.f32 %v1384_v13, %v1228_v44  ;;  %2152 = vmatpush3.bf16.msra.mxu0 (!%p1727_p13), %v2086_v39 }
 0x208   : > { %2153 = vmatprep.subr.bf16.mxu0 (!%p1727_p13), %v2503_v7 }
 0x209   : > { %v1367_v41 = vrot.slane %v1366_v2, 2  ;;  %v1407_v45 = vrot.slane %v1406_v52, 4  ;;  %v1386_v15 = vrot.slane %v1385_v17, 4 }
 0x20b   : > { %v1368_v59 = vadd.f32 %v1367_v41, %v1366_v2  ;;  %v1408_v27 = vadd.f32 %v1407_v45, %v1406_v52  ;;  %v1387_v26 = vadd.f32 %v1386_v15, %v1385_v17  ;;  %2155 = vmatpush3.bf16.msra.mxu0 (!%p1727_p13), %v2087_v38 }
 0x20c   : > { %2156 = vmatprep.subr.bf16.mxu0 (!%p1727_p13), %v2503_v7 }
 0x20d   : > { %v1369_v29 = vrot.slane %v1368_v59, 1  ;;  %v1409_v3 = vrot.slane %v1408_v27, 2  ;;  %v1388_v24 = vrot.slane %v1387_v26, 2 }
 0x20f   : > { %v1410_v16 = vadd.f32 %v1409_v3, %v1408_v27  ;;  %v1389_v40 = vadd.f32 %v1388_v24, %v1387_v26  ;;  %v1370_v36 = vadd.f32 %v1369_v29, %v1368_v59  ;;  %2158 = vmatpush3.bf16.msra.mxu0 (!%p1727_p13), %v2088_v55 }
 0x210   : > { %2159 = vmatprep.subr.bf16.mxu0 (!%p1727_p13), %v2503_v7 }
 0x211   : > { %v1411_v51 = vrot.slane %v1410_v16, 1  ;;  %v1390_v53 = vrot.slane %v1389_v40, 1  ;;  %v1430_v19 = vsel %vm1429_vm5, %v1370_v36, %v3195_v5 }
 0x213   : > { %v1412_v1 = vadd.f32 %v1411_v51, %v1410_v16  ;;  %v1391_v37 = vadd.f32 %v1390_v53, %v1389_v40  ;;  %2161 = vmatpush3.bf16.msra.mxu0 (!%p1727_p13), %v2089_v48 }
 0x214   : > { %2162 = vmatprep.subr.bf16.mxu0 (!%p1727_p13), %v2503_v7 }
 0x215   : > { %v1432_v0 = vsel %vm1431_vm6, %v1391_v37, %v1430_v19 }
 0x216   : > { %v1434_v21 = vsel %vm1433_vm7, %v1412_v1, %v1432_v0 }
 0x217   : > { %v1436_v42 = vadd.f32 %v1434_v21, %v580_v18  ;;  %2164 = vmatpush3.bf16.msra.mxu0 (!%p1727_p13), %v2090_v62 }
 0x218   : > { %2165 = vmatprep.subr.bf16.mxu0 (!%p1727_p13), %v2503_v7 }
 0x219   : > { %1437 = vst [vmem:[#allocation2] sm:$0xff] %v1436_v42 }
 0x21b   : > { %2167 = vmatpush3.bf16.msra.mxu0 (!%p1727_p13), %v2091_v63 }
 0x220   : > { %v1450_v25 = vld [vmem:[#allocation2] sm:$0xff] (!%p1727_p13) }
 0x23b   : > { %1447 = sbr.rel (%p1727_p13) target bundleno = 1102 (0x44e), region = 56 }
 0x23e   : > { %v1440_v32 = vpop.xlane.xlu0 %1439 }
 0x23f   : > { %v1441_v35 = vadd.f32 %v1440_v32, %v1438_v54 }
 0x241   : > { %1443 = vst.msk [vmem:[#allocation3] sm:$0xff] %vm1442_vm8, %v1441_v35 }
 0x248   : > { %v1448_v60 = vld [vmem:[#allocation3] sm:$0xff] }
 0x249   : > { %v1449_v6 = vmax.f32 %v1448_v60, 1.0 }
 0x24b   : > { %1453 = vperm.xlu0 %2298, %v1449_v6  }
 0x2ca   : > { %v1454_v9 = vpop.permute.xlu0 %1453 }
 0x2cb   : > { %2299 = vrcp.f32 %v1454_v9 }
 0x2d5   : > { %v2300_v23 = vpop.eup %2299 }
 0x2d6   : > { %v1457_v12 = vmul.f32 %v2300_v23, %v1450_v25 }
 0x2d8   : > { %2142 = vmatmul.mubr.f32.vlgmr.msra.gmra.mrb[0].mxu0 %v1457_v12 }
 0x3ab   : > { %v1563_v8 = vpop.f32.mrb[0].mxu0 }
 0x3ac   : > { %v1564_v50 = vadd.f32 %v1728_v31, %v1563_v8  ;;  %v2143_v20 = vpop.f32.mrb[1].mxu0 }
 0x3ae   : > { %v1567_v61 = vmul.f32 %v1564_v50, %v1564_v50 }
 0x3b0   : > { %1568 = vadd.xlane.f32.xlu0 %v1567_v61 }
 0x43d   : > { %v1569_v33 = vpop.xlane.xlu0 %1568 }
 0x43e   : > { %v1570_v43 = vmax.f32 %v1569_v33, 1e-24 }
 0x440   : > { %2301 = vrsqrt.f32 %v1570_v43 }
 0x44a   : > { %v2302_v10 = vpop.eup %2301 }
 0x44b   : > { %v1572_v46 = vmul.f32 %v2302_v10, %v1564_v50 }
 0x44d   : > { %1573 = vst [vmem:[%s312_s10] sm:$0xff] %v1572_v46 }
 0x44e PF: > { %s1730_s8 = sshll.u32 %s2477_s22, 7  ;;  %s1588_s9 = sshll.u32 %s312_s10, 4  ;;  %s1589_s9 = int_to_ptr.vmem [resolvable:$true] %s1588_s9 }
 0x44f   : > { %s3099_s14 = scalar_lea.hbm %s3163_s4, %s1730_s8  ;;  %s1575_s7 = scalar_lea.sflag [#allocation6], %s310_s18 }
 0x450   : > { %s2359_s13 = scalar_lea.vmem %s1589_s9, 128  ;;  %p3196_p1 = scmp.ne.s32.totalorder %s3181_s11, 0 }
 0x451   : > { %p2360_p0 = scmp.ne.s32.totalorder %s1589_s9, %s2359_s13  ;;  %s2506_s29 = smov [#allocation10]  }
 0x452   : > { %s2363_s27 = sshll.u32 %s2506_s29, 4  ;;  %s2364_s27 = int_to_ptr.vmem [resolvable:$false] %s2363_s27 }
 0x453   : > { %p2361_p2 = pnand %p2360_p0, %p3196_p1  ;;  %s2365_s5 = scalar_lea.vmem %s2364_s27, 256 }
 0x454   : > { %p2366_p10 = scmp.lt.s32.totalorder %s1589_s9, %s2364_s27  ;;  %p2367_p3 = scmp.lt.s32.totalorder %s2365_s5, %s2359_s13 }
 0x455   : > { %p2362_p8 = pneg %p2361_p2 }
 0x456   : > { %p2368_p7 = por %p2367_p3, %p2366_p10 }
 0x458   : > { %p2369_p4 = pnand %p2368_p7, %p2362_p8 }
 0x45a   : > { %2372 = shalt.err (!%p2369_p4)
}
 0x45b   : > { %s2373_s22 = scalar_lea.hbm %s3099_s14, 128  ;;  %s2377_s0 = scalar_lea.hbm %s3163_s4, 256 }
 0x45c   : > { %p2374_p12 = scmp.ne.s32.totalorder %s3099_s14, %s2373_s22  ;;  %p2378_p9 = scmp.lt.u32.totalorder %s3099_s14, %s3163_s4 }
 0x45d   : > { %p2379_p11 = scmp.lt.u32.totalorder %s2377_s0, %s2373_s22  ;;  %p2381_p0 = scmp.lt.u32.totalorder %s2373_s22, %s3099_s14 }
 0x45e   : > { %p2375_p5 = pnand %p2374_p12, %p3196_p1 }
 0x45f   : > { %p2380_p13 = por %p2379_p11, %p2378_p9 }
 0x460   : > { %p2376_p6 = pneg %p2375_p5 }
 0x461   : > { %p2382_p2 = por %p2381_p0, %p2380_p13 }
 0x463   : > { %p2383_p8 = pnand %p2382_p2, %p2376_p6 }
 0x465   : > { %2386 = shalt.err (!%p2383_p8)
}
 0x466   : > { %2183 = dma.vmem_to_hbm [thread:$0]  (%p3196_p1), %s1589_s9, 128, %s3099_s14, %s1575_s7  }
 0x467 PF: > { %s3197_s28 = sld [smem:[#allocation18_spill]]  ;;  %s3198_s10 = sld [smem:[#allocation24_spill]] }
 0x468   : > { %p2195_p10 = scmp.ge.s32.totalorder %s2489_s25, 2 }
 0x46d   : > { %s1600_s21 = sand.u32 1, %s3197_s28   ;;  %p3199_p3 = scmp.ne.s32.totalorder %s3198_s10, 0 }
 0x46e   : > { %s1601_s26 = scalar_lea.sflag [#allocation6], %s1600_s21 }
 0x46f   : > { %p2190_p7 = pnand %p2195_p10, %p3199_p3 }
 0x471   : > { %2444 = dma.done.wait (!%p2190_p7), %s1601_s26, 128  }
 0x472   : > { %2446 = vsyncadd (!%p2190_p7), %s1601_s26, 4294967168  ;;  %s23_s25 = sadd.s32 1, %s2489_s25   ;;  %s3200_s8 = sld [smem:[#allocation19_spill]] }
 0x473   : > { %p20_p4 = scmp.ge.s32.totalorder %s23_s25, 6   ;;  %s3201_s17 = sld [smem:[#allocation22_spill]] }
 0x474   : > { %s3202_s11 = sld [smem:[#allocation23_spill]]  ;;  %s3203_s30 = sld [smem:[#allocation20_spill]] }
 0x475   : > { %s3204_s14 = sld [smem:[#allocation21_spill]]  ;;  %s3205_s15 = smov %s2453_s16 }
 0x476   : > { %s3207_s18 = smov %s2465_s19  ;;  %s3208_s19 = smov %s2469_s20 }
 0x477   : > { %s3210_s21 = smov %s2481_s23  ;;  %s3211_s22 = smov %s2485_s24 }
 0x478   : > { %s3206_s16 = smov %s3200_s8  ;;  %22 = sbr.rel (!%p20_p4) target bundleno = 13 (0xd), region = 111 }
 0x47a   : > { %s3209_s20 = smov %s3202_s11  ;;  %s3212_s23 = smov %s3203_s30 }
 0x47b   : > { %s3213_s24 = smov %s3204_s14 }
 0x47f   :  { %1606 = vsyncpa [#allocation5], 1 }
 0x480   :  { %1608 = vsyncpa [#allocation5 + $0x1], 1 }
 0x481   :  { %1609 = vsyncpa [#allocation8], 1 }
 0x482   :  { %1611 = vsyncpa [#allocation8 + $0x1], 1 }
 0x483   :  { %1612 = vsyncpa [#allocation6], 1 }
 0x484   :  { %1614 = vsyncpa [#allocation6 + $0x1], 1 }

</bundles_post_ra>
